<compile_context>
chip_gen: v5e
topology: v5e:2x2
jax: 0.10.0
libtpu: 0.0.40
codegen_flags: <defaults>
</compile_context>

<pallas_src>
import functools

import jax
import jax.numpy as jnp
import numpy as np
from jax import lax
from jax.experimental import pallas as pl
from jax.experimental.pallas import tpu as pltpu


OUT_LANES = 128  # lane-dense output width (vreg lane count)


# ----------------------------- small helpers -------------------------------

def _round_up(a, b):
    return (a + b - 1) // b * b


def _pad_rows(a, n):
    if a.shape[0] == n:
        return a
    return jnp.zeros((n,) + a.shape[1:], a.dtype).at[: a.shape[0]].set(a)


def _resident(shape):
    # Whole-array block with a constant index_map -> fetched once, stays in VMEM
    # across all grid steps (no re-DMA when the block index does not change).
    nd = len(shape)
    return pl.BlockSpec(shape, lambda i, nd=nd: (0,) * nd)


# ----------------------------- fused Pallas kernel --------------------------

def enc_model_kernel(xs_ref, ys_ref, x_ref,
                     wa1a, wa1b, ba1, wa2, ba2, wa3, ba3,      # AugInfo (pre-transposed)
                     we1, be1, we2, be2,                       # TaskEnc (pre-transposed)
                     w1, b1, w2a, w2b, b2, w3, b3, w4, b4,     # LR      (pre-transposed)
                     w5p, b5p,                                 # last layer, padded to 128 lanes
                     y_ref, *, n_spt):
    dot = lambda a, b: jnp.dot(a, b, preferred_element_type=jnp.float32)
    relu = lambda v: jnp.maximum(v, 0.0)

    # ---- AugInfo: cat([x_spt, y_spt]) @ Wa1.T == x_spt @ Wa1a + y_spt @ Wa1b
    xs = xs_ref[...]
    ys = ys_ref[...]
    if ys.shape[1] == 1:
        y_part = ys * wa1b[...]          # K=1 contraction == broadcast multiply (pure VPU)
    else:
        y_part = dot(ys, wa1b[...])
    h = relu(dot(xs, wa1a[...]) + y_part + ba1[...])
    h = relu(dot(h, wa2[...]) + ba2[...])
    h = dot(h, wa3[...]) + ba3[...]

    n_spt_pad = xs.shape[0]
    if n_spt_pad != n_spt:               # static check: mask zero-padded support rows
        mask = lax.broadcasted_iota(jnp.int32, (n_spt_pad, 1), 0) < n_spt
        h = jnp.where(mask, h, 0.0)
    aug = jnp.sum(h, axis=0, keepdims=True) * (1.0 / n_spt)     # (1, n_out_aug)

    # ---- TaskEnc + encode_param: per-task constants (independent of query rows)
    t = relu(dot(aug, we1[...]) + be1[...])
    emb = dot(t, we2[...]) + be2[...]                           # (1, n_out_emb)
    gate = jax.nn.sigmoid(emb)                                  # EUP; scales W5 input features
    b2_eff = dot(aug, w2b[...]) + b2[...]                       # aug contribution folded into bias

    # ---- LR linear_block on this query-row tile
    h = relu(dot(x_ref[...], w1[...]) + b1[...])
    h = relu(dot(h, w2a[...]) + b2_eff)                         # == cat([h, aug_vec]) @ W2.T + b2
    h = relu(dot(h, w3[...]) + b3[...])
    h = relu(dot(h, w4[...]) + b4[...])
    # sigmoid(task_emb) * W5 scales W5's input-feature axis == scaling h's columns.
    y_ref[...] = dot(h * gate, w5p[...]) + b5p[...]             # lane-dense (tile, 128) store


# ----------------------------- wrapper --------------------------------------

def pallas_enc_model_forward(x_spt, y_spt, x, kernel_args, n_out, *, tile_rows=256):
    n_spt = x_spt.shape[0]
    n_spt_pad = _round_up(max(n_spt, 1), 8)
    xs = _pad_rows(x_spt.astype(jnp.float32), n_spt_pad)
    ys = _pad_rows(y_spt.astype(jnp.float32), n_spt_pad)

    n = x.shape[0]
    tile = min(tile_rows, _round_up(n, 8))
    n_pad = _round_up(n, tile)
    xp = _pad_rows(x.astype(jnp.float32), n_pad)

    args = (xs, ys, xp) + tuple(kernel_args)
    in_specs = [
        _resident(xs.shape),
        _resident(ys.shape),
        pl.BlockSpec((tile, xp.shape[1]), lambda i: (i, 0)),
    ] + [_resident(a.shape) for a in kernel_args]

    out = pl.pallas_call(
        functools.partial(enc_model_kernel, n_spt=n_spt),
        grid=(n_pad // tile,),
        in_specs=in_specs,
        out_specs=pl.BlockSpec((tile, OUT_LANES), lambda i: (i, 0)),
        out_shape=jax.ShapeDtypeStruct((n_pad, OUT_LANES), jnp.float32),
        compiler_params=pltpu.CompilerParams(dimension_semantics=("parallel",)),
    )(*args)
    return out[:n, :n_out]


# ----------------------------- parameters -----------------------------------

def _kaiming_fan_in(key, out_f, in_f):
    # torch.nn.init.kaiming_normal_(mode='fan_in', nonlinearity='leaky_relu', a=0)
    std = (2.0 / in_f) ** 0.5
    return (std * jax.random.normal(key, (out_f, in_f))).astype(jnp.float32)


class EncModelPallas:
    """Fused task_encoder -> param_encoder -> encode_param -> forward (one pallas_call)."""

    def __init__(self, key, n_in, n_hid, n_out, n_xyaug, n_hid_emb, n_out_emb,
                 n_xy, n_hid_aug, n_out_aug):
        assert n_in + n_out == n_xy, "dimension mismatching."
        assert n_xyaug == n_out_aug
        assert n_out_emb == n_hid[3]  # required by sigmoid(task_emb) * linear5.weight
        ks = jax.random.split(key, 10)
        z = lambda d: jnp.zeros((1, d), jnp.float32)

        p = {}
        # AugInfo: n_xy -> n_hid_aug[0] -> n_hid_aug[1] -> n_out_aug
        p["wa1"], p["ba1"] = _kaiming_fan_in(ks[0], n_hid_aug[0], n_xy), z(n_hid_aug[0])
        p["wa2"], p["ba2"] = _kaiming_fan_in(ks[1], n_hid_aug[1], n_hid_aug[0]), z(n_hid_aug[1])
        p["wa3"], p["ba3"] = _kaiming_fan_in(ks[2], n_out_aug, n_hid_aug[1]), z(n_out_aug)
        # TaskEnc: n_xyaug -> n_hid_emb -> n_out_emb
        p["we1"], p["be1"] = _kaiming_fan_in(ks[3], n_hid_emb, n_xyaug), z(n_hid_emb)
        p["we2"], p["be2"] = _kaiming_fan_in(ks[4], n_out_emb, n_hid_emb), z(n_out_emb)
        # LR: n_in -> h0 ; [h0 + n_out_aug] -> h1 -> h2 -> h3 -> n_out
        p["w1"], p["b1"] = _kaiming_fan_in(ks[5], n_hid[0], n_in), z(n_hid[0])
        p["w2"], p["b2"] = _kaiming_fan_in(ks[6], n_hid[1], n_hid[0] + n_out_aug), z(n_hid[1])
        p["w3"], p["b3"] = _kaiming_fan_in(ks[7], n_hid[2], n_hid[1]), z(n_hid[2])
        p["w4"], p["b4"] = _kaiming_fan_in(ks[8], n_hid[3], n_hid[2]), z(n_hid[3])
        p["w5"], p["b5"] = _kaiming_fan_in(ks[9], n_out, n_hid[3]), z(n_out)
        self.params = p
        self.n_in, self.n_out = n_in, n_out

        # Kernel layout: pre-transposed (in_features, out_features) weights, concat splits,
        # last layer zero-padded to 128 output lanes for unmasked stores.
        T = lambda w: jnp.transpose(w)
        wa1T = T(p["wa1"])                     # (n_xy, h_aug0) -> split at n_in
        w2T = T(p["w2"])                       # (h0 + n_out_aug, h1) -> split at h0
        w5p = jnp.zeros((n_hid[3], OUT_LANES), jnp.float32).at[:, :n_out].set(T(p["w5"]))
        b5p = jnp.zeros((1, OUT_LANES), jnp.float32).at[:, :n_out].set(p["b5"])
        self.kernel_args = (
            wa1T[:n_in], wa1T[n_in:], p["ba1"],
            T(p["wa2"]), p["ba2"], T(p["wa3"]), p["ba3"],
            T(p["we1"]), p["be1"], T(p["we2"]), p["be2"],
            T(p["w1"]), p["b1"],
            w2T[:n_hid[0]], w2T[n_hid[0]:], p["b2"],
            T(p["w3"]), p["b3"], T(p["w4"]), p["b4"],
            w5p, b5p,
        )

    def forward(self, x_spt, y_spt, x, tile_rows=256):
        return pallas_enc_model_forward(x_spt, y_spt, x, self.kernel_args,
                                        self.n_out, tile_rows=tile_rows)


# ----------------------------- pure-JAX reference ---------------------------

def ref_forward(p, x_spt, y_spt, x):
    relu = lambda v: jnp.maximum(v, 0.0)
    xy = jnp.concatenate([x_spt, y_spt], axis=-1)
    h = relu(xy @ p["wa1"].T + p["ba1"])
    h = relu(h @ p["wa2"].T + p["ba2"])
    h = h @ p["wa3"].T + p["ba3"]
    aug = jnp.mean(h, axis=0, keepdims=True)

    t = relu(aug @ p["we1"].T + p["be1"])
    emb = t @ p["we2"].T + p["be2"]

    aug_vec = jnp.tile(aug, (x.shape[0], 1))
    h = relu(x @ p["w1"].T + p["b1"])
    h = jnp.concatenate([h, aug_vec], axis=-1)
    h = relu(h @ p["w2"].T + p["b2"])
    h = relu(h @ p["w3"].T + p["b3"])
    h = relu(h @ p["w4"].T + p["b4"])
    w5a = jax.nn.sigmoid(emb) * p["w5"]
    return h @ w5a.T + p["b5"]


# ----------------------------- main ------------------------------------------

if __name__ == "__main__":
    key = jax.random.PRNGKey(0)
    k_param, k_xs, k_ys, k_x = jax.random.split(key, 4)

    # Image-completion dims: (x, y) pixel coordinate -> pixel value.
    n_in, n_out = 2, 1
    n_xy = n_in + n_out
    n_hid = [32, 32, 32, 32]
    n_hid_aug = [32, 32]
    n_out_aug = 16
    n_xyaug = n_out_aug
    n_hid_emb = 32
    n_out_emb = n_hid[3]

    n_spt = 10            # support pixels (padded to 16 rows inside the wrapper, masked mean)
    n_qry = 32 * 32       # full 32x32 query grid -> 4 row tiles of 256 through the Pallas grid

    x_spt = jax.random.normal(k_xs, (n_spt, n_in), jnp.float32)
    y_spt = jax.random.normal(k_ys, (n_spt, n_out), jnp.float32)
    x_qry = jax.random.normal(k_x, (n_qry, n_in), jnp.float32)

    model = EncModelPallas(k_param, n_in, n_hid, n_out, n_xyaug, n_hid_emb,
                           n_out_emb, n_xy, n_hid_aug, n_out_aug)

    y = jax.block_until_ready(model.forward(x_spt, y_spt, x_qry))
    y_ref = jax.block_until_ready(ref_forward(model.params, x_spt, y_spt, x_qry))
    np.testing.assert_allclose(np.asarray(y), np.asarray(y_ref), rtol=2e-5, atol=2e-5)

    print("KERNEL_OK")
</pallas_src>

<mosaic_0001>
module attributes {stable_mosaic.version = 11 : i64} {
  func.func @enc_model_kernel(%arg0: i32, %arg1: memref<16x2xf32, #tpu.memory_space<vmem>>, %arg2: memref<16x1xf32, #tpu.memory_space<vmem>>, %arg3: memref<256x2xf32, #tpu.memory_space<vmem>>, %arg4: memref<2x32xf32, #tpu.memory_space<vmem>>, %arg5: memref<1x32xf32, #tpu.memory_space<vmem>>, %arg6: memref<1x32xf32, #tpu.memory_space<vmem>>, %arg7: memref<32x32xf32, #tpu.memory_space<vmem>>, %arg8: memref<1x32xf32, #tpu.memory_space<vmem>>, %arg9: memref<32x16xf32, #tpu.memory_space<vmem>>, %arg10: memref<1x16xf32, #tpu.memory_space<vmem>>, %arg11: memref<16x32xf32, #tpu.memory_space<vmem>>, %arg12: memref<1x32xf32, #tpu.memory_space<vmem>>, %arg13: memref<32x32xf32, #tpu.memory_space<vmem>>, %arg14: memref<1x32xf32, #tpu.memory_space<vmem>>, %arg15: memref<2x32xf32, #tpu.memory_space<vmem>>, %arg16: memref<1x32xf32, #tpu.memory_space<vmem>>, %arg17: memref<32x32xf32, #tpu.memory_space<vmem>>, %arg18: memref<16x32xf32, #tpu.memory_space<vmem>>, %arg19: memref<1x32xf32, #tpu.memory_space<vmem>>, %arg20: memref<32x32xf32, #tpu.memory_space<vmem>>, %arg21: memref<1x32xf32, #tpu.memory_space<vmem>>, %arg22: memref<32x32xf32, #tpu.memory_space<vmem>>, %arg23: memref<1x32xf32, #tpu.memory_space<vmem>>, %arg24: memref<32x128xf32, #tpu.memory_space<vmem>>, %arg25: memref<1x128xf32, #tpu.memory_space<vmem>>, %arg26: memref<256x128xf32, #tpu.memory_space<vmem>>) attributes {dimension_semantics = [#tpu.dimension_semantics<parallel>], iteration_bounds = array<i64: 4>, scalar_prefetch = 0 : i64, scratch_operands = 0 : i64, tpu.core_type = #tpu.core_type<tc>, window_params = [{pipeline_mode = #tpu.pipeline_mode<synchronous>, transform_indices = @transform_0, window_bounds = array<i64: 16, 2>}, {pipeline_mode = #tpu.pipeline_mode<synchronous>, transform_indices = @transform_1, window_bounds = array<i64: 16, 1>}, {transform_indices = @transform_2, window_bounds = array<i64: 256, 2>}, {pipeline_mode = #tpu.pipeline_mode<synchronous>, transform_indices = @transform_3, window_bounds = array<i64: 2, 32>}, {pipeline_mode = #tpu.pipeline_mode<synchronous>, transform_indices = @transform_4, window_bounds = array<i64: 1, 32>}, {pipeline_mode = #tpu.pipeline_mode<synchronous>, transform_indices = @transform_5, window_bounds = array<i64: 1, 32>}, {pipeline_mode = #tpu.pipeline_mode<synchronous>, transform_indices = @transform_6, window_bounds = array<i64: 32, 32>}, {pipeline_mode = #tpu.pipeline_mode<synchronous>, transform_indices = @transform_7, window_bounds = array<i64: 1, 32>}, {pipeline_mode = #tpu.pipeline_mode<synchronous>, transform_indices = @transform_8, window_bounds = array<i64: 32, 16>}, {pipeline_mode = #tpu.pipeline_mode<synchronous>, transform_indices = @transform_9, window_bounds = array<i64: 1, 16>}, {pipeline_mode = #tpu.pipeline_mode<synchronous>, transform_indices = @transform_10, window_bounds = array<i64: 16, 32>}, {pipeline_mode = #tpu.pipeline_mode<synchronous>, transform_indices = @transform_11, window_bounds = array<i64: 1, 32>}, {pipeline_mode = #tpu.pipeline_mode<synchronous>, transform_indices = @transform_12, window_bounds = array<i64: 32, 32>}, {pipeline_mode = #tpu.pipeline_mode<synchronous>, transform_indices = @transform_13, window_bounds = array<i64: 1, 32>}, {pipeline_mode = #tpu.pipeline_mode<synchronous>, transform_indices = @transform_14, window_bounds = array<i64: 2, 32>}, {pipeline_mode = #tpu.pipeline_mode<synchronous>, transform_indices = @transform_15, window_bounds = array<i64: 1, 32>}, {pipeline_mode = #tpu.pipeline_mode<synchronous>, transform_indices = @transform_16, window_bounds = array<i64: 32, 32>}, {pipeline_mode = #tpu.pipeline_mode<synchronous>, transform_indices = @transform_17, window_bounds = array<i64: 16, 32>}, {pipeline_mode = #tpu.pipeline_mode<synchronous>, transform_indices = @transform_18, window_bounds = array<i64: 1, 32>}, {pipeline_mode = #tpu.pipeline_mode<synchronous>, transform_indices = @transform_19, window_bounds = array<i64: 32, 32>}, {pipeline_mode = #tpu.pipeline_mode<synchronous>, transform_indices = @transform_20, window_bounds = array<i64: 1, 32>}, {pipeline_mode = #tpu.pipeline_mode<synchronous>, transform_indices = @transform_21, window_bounds = array<i64: 32, 32>}, {pipeline_mode = #tpu.pipeline_mode<synchronous>, transform_indices = @transform_22, window_bounds = array<i64: 1, 32>}, {pipeline_mode = #tpu.pipeline_mode<synchronous>, transform_indices = @transform_23, window_bounds = array<i64: 32, 128>}, {pipeline_mode = #tpu.pipeline_mode<synchronous>, transform_indices = @transform_24, window_bounds = array<i64: 1, 128>}, {transform_indices = @transform_25, window_bounds = array<i64: 256, 128>}]} {
    %c0 = arith.constant 0 : index
    %c0_0 = arith.constant 0 : index
    %0 = vector.load %arg1[%c0, %c0_0] : memref<16x2xf32, #tpu.memory_space<vmem>>, vector<16x2xf32>
    %c0_1 = arith.constant 0 : index
    %c0_2 = arith.constant 0 : index
    %1 = vector.load %arg2[%c0_1, %c0_2] : memref<16x1xf32, #tpu.memory_space<vmem>>, vector<16x1xf32>
    %c0_3 = arith.constant 0 : index
    %c0_4 = arith.constant 0 : index
    %2 = vector.load %arg5[%c0_3, %c0_4] : memref<1x32xf32, #tpu.memory_space<vmem>>, vector<1x32xf32>
    %3 = vector.broadcast %1 : vector<16x1xf32> to vector<16x32xf32>
    %4 = vector.broadcast %2 : vector<1x32xf32> to vector<16x32xf32>
    %5 = arith.mulf %3, %4 : vector<16x32xf32>
    %c0_5 = arith.constant 0 : index
    %c0_6 = arith.constant 0 : index
    %6 = vector.load %arg4[%c0_5, %c0_6] : memref<2x32xf32, #tpu.memory_space<vmem>>, vector<2x32xf32>
    %cst = arith.constant dense<0.000000e+00> : vector<16x32xf32>
    %7 = tpu.matmul %0, %6, %cst {dimension_numbers = #tpu.dot_dimension_numbers<[1], [0], [0], [1], [0, 0, 1, 1], [], []>} : vector<16x2xf32>, vector<2x32xf32>, vector<16x32xf32> -> vector<16x32xf32>
    %8 = arith.addf %7, %5 : vector<16x32xf32>
    %c0_7 = arith.constant 0 : index
    %c0_8 = arith.constant 0 : index
    %9 = vector.load %arg6[%c0_7, %c0_8] : memref<1x32xf32, #tpu.memory_space<vmem>>, vector<1x32xf32>
    %10 = vector.broadcast %9 : vector<1x32xf32> to vector<16x32xf32>
    %11 = arith.addf %8, %10 : vector<16x32xf32>
    %cst_9 = arith.constant 0.000000e+00 : f32
    %12 = vector.broadcast %cst_9 : f32 to vector<16x32xf32>
    %13 = arith.maximumf %11, %12 : vector<16x32xf32>
    %c0_10 = arith.constant 0 : index
    %c0_11 = arith.constant 0 : index
    %14 = vector.load %arg7[%c0_10, %c0_11] : memref<32x32xf32, #tpu.memory_space<vmem>>, vector<32x32xf32>
    %cst_12 = arith.constant dense<0.000000e+00> : vector<16x32xf32>
    %15 = tpu.matmul %13, %14, %cst_12 {dimension_numbers = #tpu.dot_dimension_numbers<[1], [0], [0], [1], [0, 0, 1, 1], [], []>} : vector<16x32xf32>, vector<32x32xf32>, vector<16x32xf32> -> vector<16x32xf32>
    %c0_13 = arith.constant 0 : index
    %c0_14 = arith.constant 0 : index
    %16 = vector.load %arg8[%c0_13, %c0_14] : memref<1x32xf32, #tpu.memory_space<vmem>>, vector<1x32xf32>
    %17 = vector.broadcast %16 : vector<1x32xf32> to vector<16x32xf32>
    %18 = arith.addf %15, %17 : vector<16x32xf32>
    %cst_15 = arith.constant 0.000000e+00 : f32
    %19 = vector.broadcast %cst_15 : f32 to vector<16x32xf32>
    %20 = arith.maximumf %18, %19 : vector<16x32xf32>
    %c0_16 = arith.constant 0 : index
    %c0_17 = arith.constant 0 : index
    %21 = vector.load %arg9[%c0_16, %c0_17] : memref<32x16xf32, #tpu.memory_space<vmem>>, vector<32x16xf32>
    %cst_18 = arith.constant dense<0.000000e+00> : vector<16x16xf32>
    %22 = tpu.matmul %20, %21, %cst_18 {dimension_numbers = #tpu.dot_dimension_numbers<[1], [0], [0], [1], [0, 0, 1, 1], [], []>} : vector<16x32xf32>, vector<32x16xf32>, vector<16x16xf32> -> vector<16x16xf32>
    %c0_19 = arith.constant 0 : index
    %c0_20 = arith.constant 0 : index
    %23 = vector.load %arg10[%c0_19, %c0_20] : memref<1x16xf32, #tpu.memory_space<vmem>>, vector<1x16xf32>
    %24 = vector.broadcast %23 : vector<1x16xf32> to vector<16x16xf32>
    %25 = arith.addf %22, %24 : vector<16x16xf32>
    %26 = tpu.iota {dimensions = array<i32: 0>} : vector<16x1xi32>
    %c10_i32 = arith.constant 10 : i32
    %27 = vector.broadcast %c10_i32 : i32 to vector<16x1xi32>
    %28 = arith.cmpi slt, %26, %27 : vector<16x1xi32>
    %cst_21 = arith.constant 0.000000e+00 : f32
    %29 = vector.shape_cast %28 : vector<16x1xi1> to vector<16x1xi1>
    %30 = vector.broadcast %29 : vector<16x1xi1> to vector<16x16xi1>
    %31 = vector.broadcast %cst_21 : f32 to vector<16x16xf32>
    %32 = arith.select %30, %25, %31 : vector<16x16xi1>, vector<16x16xf32>
    %cst_22 = arith.constant dense<0.000000e+00> : vector<16xf32>
    %33 = vector.multi_reduction <add>, %32, %cst_22 [0] : vector<16x16xf32> to vector<16xf32>
    %34 = vector.shape_cast %33 : vector<16xf32> to vector<1x16xf32>
    %cst_23 = arith.constant 1.000000e-01 : f32
    %35 = vector.broadcast %cst_23 : f32 to vector<1x16xf32>
    %36 = arith.mulf %34, %35 : vector<1x16xf32>
    %c0_24 = arith.constant 0 : index
    %c0_25 = arith.constant 0 : index
    %37 = vector.load %arg11[%c0_24, %c0_25] : memref<16x32xf32, #tpu.memory_space<vmem>>, vector<16x32xf32>
    %cst_26 = arith.constant dense<0.000000e+00> : vector<1x32xf32>
    %38 = tpu.matmul %36, %37, %cst_26 {dimension_numbers = #tpu.dot_dimension_numbers<[1], [0], [0], [1], [0, 0, 1, 1], [], []>} : vector<1x16xf32>, vector<16x32xf32>, vector<1x32xf32> -> vector<1x32xf32>
    %c0_27 = arith.constant 0 : index
    %c0_28 = arith.constant 0 : index
    %39 = vector.load %arg12[%c0_27, %c0_28] : memref<1x32xf32, #tpu.memory_space<vmem>>, vector<1x32xf32>
    %40 = arith.addf %38, %39 : vector<1x32xf32>
    %cst_29 = arith.constant 0.000000e+00 : f32
    %41 = vector.broadcast %cst_29 : f32 to vector<1x32xf32>
    %42 = arith.maximumf %40, %41 : vector<1x32xf32>
    %c0_30 = arith.constant 0 : index
    %c0_31 = arith.constant 0 : index
    %43 = vector.load %arg13[%c0_30, %c0_31] : memref<32x32xf32, #tpu.memory_space<vmem>>, vector<32x32xf32>
    %cst_32 = arith.constant dense<0.000000e+00> : vector<1x32xf32>
    %44 = tpu.matmul %42, %43, %cst_32 {dimension_numbers = #tpu.dot_dimension_numbers<[1], [0], [0], [1], [0, 0, 1, 1], [], []>} : vector<1x32xf32>, vector<32x32xf32>, vector<1x32xf32> -> vector<1x32xf32>
    %c0_33 = arith.constant 0 : index
    %c0_34 = arith.constant 0 : index
    %45 = vector.load %arg14[%c0_33, %c0_34] : memref<1x32xf32, #tpu.memory_space<vmem>>, vector<1x32xf32>
    %46 = arith.addf %44, %45 : vector<1x32xf32>
    %47 = arith.negf %46 : vector<1x32xf32>
    %48 = math.exp %47 : vector<1x32xf32>
    %cst_35 = arith.constant 1.000000e+00 : f32
    %49 = vector.broadcast %cst_35 : f32 to vector<1x32xf32>
    %50 = arith.addf %49, %48 : vector<1x32xf32>
    %51 = arith.divf %49, %50 : vector<1x32xf32>
    %c0_36 = arith.constant 0 : index
    %c0_37 = arith.constant 0 : index
    %52 = vector.load %arg18[%c0_36, %c0_37] : memref<16x32xf32, #tpu.memory_space<vmem>>, vector<16x32xf32>
    %cst_38 = arith.constant dense<0.000000e+00> : vector<1x32xf32>
    %53 = tpu.matmul %36, %52, %cst_38 {dimension_numbers = #tpu.dot_dimension_numbers<[1], [0], [0], [1], [0, 0, 1, 1], [], []>} : vector<1x16xf32>, vector<16x32xf32>, vector<1x32xf32> -> vector<1x32xf32>
    %c0_39 = arith.constant 0 : index
    %c0_40 = arith.constant 0 : index
    %54 = vector.load %arg19[%c0_39, %c0_40] : memref<1x32xf32, #tpu.memory_space<vmem>>, vector<1x32xf32>
    %55 = arith.addf %53, %54 : vector<1x32xf32>
    %c0_41 = arith.constant 0 : index
    %c0_42 = arith.constant 0 : index
    %56 = vector.load %arg3[%c0_41, %c0_42] : memref<256x2xf32, #tpu.memory_space<vmem>>, vector<256x2xf32>
    %c0_43 = arith.constant 0 : index
    %c0_44 = arith.constant 0 : index
    %57 = vector.load %arg15[%c0_43, %c0_44] : memref<2x32xf32, #tpu.memory_space<vmem>>, vector<2x32xf32>
    %cst_45 = arith.constant dense<0.000000e+00> : vector<256x32xf32>
    %58 = tpu.matmul %56, %57, %cst_45 {dimension_numbers = #tpu.dot_dimension_numbers<[1], [0], [0], [1], [0, 0, 1, 1], [], []>} : vector<256x2xf32>, vector<2x32xf32>, vector<256x32xf32> -> vector<256x32xf32>
    %c0_46 = arith.constant 0 : index
    %c0_47 = arith.constant 0 : index
    %59 = vector.load %arg16[%c0_46, %c0_47] : memref<1x32xf32, #tpu.memory_space<vmem>>, vector<1x32xf32>
    %60 = vector.broadcast %59 : vector<1x32xf32> to vector<256x32xf32>
    %61 = arith.addf %58, %60 : vector<256x32xf32>
    %cst_48 = arith.constant 0.000000e+00 : f32
    %62 = vector.broadcast %cst_48 : f32 to vector<256x32xf32>
    %63 = arith.maximumf %61, %62 : vector<256x32xf32>
    %c0_49 = arith.constant 0 : index
    %c0_50 = arith.constant 0 : index
    %64 = vector.load %arg17[%c0_49, %c0_50] : memref<32x32xf32, #tpu.memory_space<vmem>>, vector<32x32xf32>
    %cst_51 = arith.constant dense<0.000000e+00> : vector<256x32xf32>
    %65 = tpu.matmul %63, %64, %cst_51 {dimension_numbers = #tpu.dot_dimension_numbers<[1], [0], [0], [1], [0, 0, 1, 1], [], []>} : vector<256x32xf32>, vector<32x32xf32>, vector<256x32xf32> -> vector<256x32xf32>
    %66 = vector.broadcast %55 : vector<1x32xf32> to vector<256x32xf32>
    %67 = arith.addf %65, %66 : vector<256x32xf32>
    %cst_52 = arith.constant 0.000000e+00 : f32
    %68 = vector.broadcast %cst_52 : f32 to vector<256x32xf32>
    %69 = arith.maximumf %67, %68 : vector<256x32xf32>
    %c0_53 = arith.constant 0 : index
    %c0_54 = arith.constant 0 : index
    %70 = vector.load %arg20[%c0_53, %c0_54] : memref<32x32xf32, #tpu.memory_space<vmem>>, vector<32x32xf32>
    %cst_55 = arith.constant dense<0.000000e+00> : vector<256x32xf32>
    %71 = tpu.matmul %69, %70, %cst_55 {dimension_numbers = #tpu.dot_dimension_numbers<[1], [0], [0], [1], [0, 0, 1, 1], [], []>} : vector<256x32xf32>, vector<32x32xf32>, vector<256x32xf32> -> vector<256x32xf32>
    %c0_56 = arith.constant 0 : index
    %c0_57 = arith.constant 0 : index
    %72 = vector.load %arg21[%c0_56, %c0_57] : memref<1x32xf32, #tpu.memory_space<vmem>>, vector<1x32xf32>
    %73 = vector.broadcast %72 : vector<1x32xf32> to vector<256x32xf32>
    %74 = arith.addf %71, %73 : vector<256x32xf32>
    %cst_58 = arith.constant 0.000000e+00 : f32
    %75 = vector.broadcast %cst_58 : f32 to vector<256x32xf32>
    %76 = arith.maximumf %74, %75 : vector<256x32xf32>
    %c0_59 = arith.constant 0 : index
    %c0_60 = arith.constant 0 : index
    %77 = vector.load %arg22[%c0_59, %c0_60] : memref<32x32xf32, #tpu.memory_space<vmem>>, vector<32x32xf32>
    %cst_61 = arith.constant dense<0.000000e+00> : vector<256x32xf32>
    %78 = tpu.matmul %76, %77, %cst_61 {dimension_numbers = #tpu.dot_dimension_numbers<[1], [0], [0], [1], [0, 0, 1, 1], [], []>} : vector<256x32xf32>, vector<32x32xf32>, vector<256x32xf32> -> vector<256x32xf32>
    %c0_62 = arith.constant 0 : index
    %c0_63 = arith.constant 0 : index
    %79 = vector.load %arg23[%c0_62, %c0_63] : memref<1x32xf32, #tpu.memory_space<vmem>>, vector<1x32xf32>
    %80 = vector.broadcast %79 : vector<1x32xf32> to vector<256x32xf32>
    %81 = arith.addf %78, %80 : vector<256x32xf32>
    %cst_64 = arith.constant 0.000000e+00 : f32
    %82 = vector.broadcast %cst_64 : f32 to vector<256x32xf32>
    %83 = arith.maximumf %81, %82 : vector<256x32xf32>
    %84 = vector.broadcast %51 : vector<1x32xf32> to vector<256x32xf32>
    %85 = arith.mulf %83, %84 : vector<256x32xf32>
    %c0_65 = arith.constant 0 : index
    %c0_66 = arith.constant 0 : index
    %86 = vector.load %arg24[%c0_65, %c0_66] : memref<32x128xf32, #tpu.memory_space<vmem>>, vector<32x128xf32>
    %cst_67 = arith.constant dense<0.000000e+00> : vector<256x128xf32>
    %87 = tpu.matmul %85, %86, %cst_67 {dimension_numbers = #tpu.dot_dimension_numbers<[1], [0], [0], [1], [0, 0, 1, 1], [], []>} : vector<256x32xf32>, vector<32x128xf32>, vector<256x128xf32> -> vector<256x128xf32>
    %c0_68 = arith.constant 0 : index
    %c0_69 = arith.constant 0 : index
    %88 = vector.load %arg25[%c0_68, %c0_69] : memref<1x128xf32, #tpu.memory_space<vmem>>, vector<1x128xf32>
    %89 = vector.broadcast %88 : vector<1x128xf32> to vector<256x128xf32>
    %90 = arith.addf %87, %89 : vector<256x128xf32>
    %c0_70 = arith.constant 0 : index
    %c0_71 = arith.constant 0 : index
    %91 = vector.load %arg26[%c0_70, %c0_71] : memref<256x128xf32, #tpu.memory_space<vmem>>, vector<256x128xf32>
    tpu.vector_store %arg26[%c0_70, %c0_71], %90 {strides = array<i32>} : memref<256x128xf32, #tpu.memory_space<vmem>>, vector<256x128xf32>,
    return
  }
  func.func @transform_0(%arg0: i32) -> (i32, i32) {
    %c0_i32 = arith.constant 0 : i32
    %c0_i32_0 = arith.constant 0 : i32
    %c0_i32_1 = arith.constant 0 : i32
    return %c0_i32, %c0_i32_0 : i32, i32
  }
  func.func @transform_1(%arg0: i32) -> (i32, i32) {
    %c0_i32 = arith.constant 0 : i32
    %c0_i32_0 = arith.constant 0 : i32
    %c0_i32_1 = arith.constant 0 : i32
    return %c0_i32, %c0_i32_0 : i32, i32
  }
  func.func @transform_2(%arg0: i32) -> (i32, i32) {
    %c0_i32 = arith.constant 0 : i32
    %c0_i32_0 = arith.constant 0 : i32
    return %arg0, %c0_i32 : i32, i32
  }
  func.func @transform_3(%arg0: i32) -> (i32, i32) {
    %c0_i32 = arith.constant 0 : i32
    %c0_i32_0 = arith.constant 0 : i32
    %c0_i32_1 = arith.constant 0 : i32
    return %c0_i32, %c0_i32_0 : i32, i32
  }
  func.func @transform_4(%arg0: i32) -> (i32, i32) {
    %c0_i32 = arith.constant 0 : i32
    %c0_i32_0 = arith.constant 0 : i32
    %c0_i32_1 = arith.constant 0 : i32
    return %c0_i32, %c0_i32_0 : i32, i32
  }
  func.func @transform_5(%arg0: i32) -> (i32, i32) {
    %c0_i32 = arith.constant 0 : i32
    %c0_i32_0 = arith.constant 0 : i32
    %c0_i32_1 = arith.constant 0 : i32
    return %c0_i32, %c0_i32_0 : i32, i32
  }
  func.func @transform_6(%arg0: i32) -> (i32, i32) {
    %c0_i32 = arith.constant 0 : i32
    %c0_i32_0 = arith.constant 0 : i32
    %c0_i32_1 = arith.constant 0 : i32
    return %c0_i32, %c0_i32_0 : i32, i32
  }
  func.func @transform_7(%arg0: i32) -> (i32, i32) {
    %c0_i32 = arith.constant 0 : i32
    %c0_i32_0 = arith.constant 0 : i32
    %c0_i32_1 = arith.constant 0 : i32
    return %c0_i32, %c0_i32_0 : i32, i32
  }
  func.func @transform_8(%arg0: i32) -> (i32, i32) {
    %c0_i32 = arith.constant 0 : i32
    %c0_i32_0 = arith.constant 0 : i32
    %c0_i32_1 = arith.constant 0 : i32
    return %c0_i32, %c0_i32_0 : i32, i32
  }
  func.func @transform_9(%arg0: i32) -> (i32, i32) {
    %c0_i32 = arith.constant 0 : i32
    %c0_i32_0 = arith.constant 0 : i32
    %c0_i32_1 = arith.constant 0 : i32
    return %c0_i32, %c0_i32_0 : i32, i32
  }
  func.func @transform_10(%arg0: i32) -> (i32, i32) {
    %c0_i32 = arith.constant 0 : i32
    %c0_i32_0 = arith.constant 0 : i32
    %c0_i32_1 = arith.constant 0 : i32
    return %c0_i32, %c0_i32_0 : i32, i32
  }
  func.func @transform_11(%arg0: i32) -> (i32, i32) {
    %c0_i32 = arith.constant 0 : i32
    %c0_i32_0 = arith.constant 0 : i32
    %c0_i32_1 = arith.constant 0 : i32
    return %c0_i32, %c0_i32_0 : i32, i32
  }
  func.func @transform_12(%arg0: i32) -> (i32, i32) {
    %c0_i32 = arith.constant 0 : i32
    %c0_i32_0 = arith.constant 0 : i32
    %c0_i32_1 = arith.constant 0 : i32
    return %c0_i32, %c0_i32_0 : i32, i32
  }
  func.func @transform_13(%arg0: i32) -> (i32, i32) {
    %c0_i32 = arith.constant 0 : i32
    %c0_i32_0 = arith.constant 0 : i32
    %c0_i32_1 = arith.constant 0 : i32
    return %c0_i32, %c0_i32_0 : i32, i32
  }
  func.func @transform_14(%arg0: i32) -> (i32, i32) {
    %c0_i32 = arith.constant 0 : i32
    %c0_i32_0 = arith.constant 0 : i32
    %c0_i32_1 = arith.constant 0 : i32
    return %c0_i32, %c0_i32_0 : i32, i32
  }
  func.func @transform_15(%arg0: i32) -> (i32, i32) {
    %c0_i32 = arith.constant 0 : i32
    %c0_i32_0 = arith.constant 0 : i32
    %c0_i32_1 = arith.constant 0 : i32
    return %c0_i32, %c0_i32_0 : i32, i32
  }
  func.func @transform_16(%arg0: i32) -> (i32, i32) {
    %c0_i32 = arith.constant 0 : i32
    %c0_i32_0 = arith.constant 0 : i32
    %c0_i32_1 = arith.constant 0 : i32
    return %c0_i32, %c0_i32_0 : i32, i32
  }
  func.func @transform_17(%arg0: i32) -> (i32, i32) {
    %c0_i32 = arith.constant 0 : i32
    %c0_i32_0 = arith.constant 0 : i32
    %c0_i32_1 = arith.constant 0 : i32
    return %c0_i32, %c0_i32_0 : i32, i32
  }
  func.func @transform_18(%arg0: i32) -> (i32, i32) {
    %c0_i32 = arith.constant 0 : i32
    %c0_i32_0 = arith.constant 0 : i32
    %c0_i32_1 = arith.constant 0 : i32
    return %c0_i32, %c0_i32_0 : i32, i32
  }
  func.func @transform_19(%arg0: i32) -> (i32, i32) {
    %c0_i32 = arith.constant 0 : i32
    %c0_i32_0 = arith.constant 0 : i32
    %c0_i32_1 = arith.constant 0 : i32
    return %c0_i32, %c0_i32_0 : i32, i32
  }
  func.func @transform_20(%arg0: i32) -> (i32, i32) {
    %c0_i32 = arith.constant 0 : i32
    %c0_i32_0 = arith.constant 0 : i32
    %c0_i32_1 = arith.constant 0 : i32
    return %c0_i32, %c0_i32_0 : i32, i32
  }
  func.func @transform_21(%arg0: i32) -> (i32, i32) {
    %c0_i32 = arith.constant 0 : i32
    %c0_i32_0 = arith.constant 0 : i32
    %c0_i32_1 = arith.constant 0 : i32
    return %c0_i32, %c0_i32_0 : i32, i32
  }
  func.func @transform_22(%arg0: i32) -> (i32, i32) {
    %c0_i32 = arith.constant 0 : i32
    %c0_i32_0 = arith.constant 0 : i32
    %c0_i32_1 = arith.constant 0 : i32
    return %c0_i32, %c0_i32_0 : i32, i32
  }
  func.func @transform_23(%arg0: i32) -> (i32, i32) {
    %c0_i32 = arith.constant 0 : i32
    %c0_i32_0 = arith.constant 0 : i32
    %c0_i32_1 = arith.constant 0 : i32
    return %c0_i32, %c0_i32_0 : i32, i32
  }
  func.func @transform_24(%arg0: i32) -> (i32, i32) {
    %c0_i32 = arith.constant 0 : i32
    %c0_i32_0 = arith.constant 0 : i32
    %c0_i32_1 = arith.constant 0 : i32
    return %c0_i32, %c0_i32_0 : i32, i32
  }
  func.func @transform_25(%arg0: i32) -> (i32, i32) {
    %c0_i32 = arith.constant 0 : i32
    %c0_i32_0 = arith.constant 0 : i32
    return %arg0, %c0_i32 : i32, i32
  }
}

</mosaic_0001>

<bundles_post_ra>
// kernel: tpu_custom_call.1
= control target key start
LH: loop header
LB: loop body
LE: loop exit
PB: predicated region body
PF: predicated region fallthrough
CT: control target
= control target key end

     0   :  { %s3546_s0 = inlined_call_operand.vmem [shape: f32[16,2], index: 0, kind: input, shape index: {}]   ;;  %s3547_s1 = inlined_call_operand.vmem [shape: f32[16,1], index: 1, kind: input, shape index: {}]   ;;  %s3548_s2 = inlined_call_operand.vmem [shape: f32[1024,2], index: 2, kind: input, shape index: {}]   ;;  %s3549_s3 = inlined_call_operand.vmem [shape: f32[2,32], index: 3, kind: input, shape index: {}]   ;;  %s3550_s4 = inlined_call_operand.vmem [shape: f32[1,32], index: 4, kind: input, shape index: {}]   ;;  %s3551_s5 = inlined_call_operand.vmem [shape: f32[1,32], index: 5, kind: input, shape index: {}]   ;;  %s3552_s6 = inlined_call_operand.vmem [shape: f32[32,32], index: 6, kind: input, shape index: {}]   ;;  %s3553_s7 = inlined_call_operand.vmem [shape: f32[1,32], index: 7, kind: input, shape index: {}]   ;;  %s3554_s8 = inlined_call_operand.vmem [shape: f32[32,16], index: 8, kind: input, shape index: {}]   ;;  %s3555_s9 = inlined_call_operand.vmem [shape: f32[1,16], index: 9, kind: input, shape index: {}]   ;;  %s3556_s10 = inlined_call_operand.vmem [shape: f32[16,32], index: 10, kind: input, shape index: {}]   ;;  %s3557_s11 = inlined_call_operand.vmem [shape: f32[1,32], index: 11, kind: input, shape index: {}]   ;;  %s3558_s12 = inlined_call_operand.vmem [shape: f32[32,32], index: 12, kind: input, shape index: {}]   ;;  %s3559_s13 = inlined_call_operand.vmem [shape: f32[1,32], index: 13, kind: input, shape index: {}]   ;;  %s3560_s14 = inlined_call_operand.vmem [shape: f32[2,32], index: 14, kind: input, shape index: {}]   ;;  %s3561_s15 = inlined_call_operand.vmem [shape: f32[1,32], index: 15, kind: input, shape index: {}]   ;;  %s3562_s16 = inlined_call_operand.vmem [shape: f32[32,32], index: 16, kind: input, shape index: {}]   ;;  %s3563_s17 = inlined_call_operand.vmem [shape: f32[16,32], index: 17, kind: input, shape index: {}]   ;;  %s3564_s18 = inlined_call_operand.vmem [shape: f32[1,32], index: 18, kind: input, shape index: {}]   ;;  %s3565_s19 = inlined_call_operand.vmem [shape: f32[32,32], index: 19, kind: input, shape index: {}]   ;;  %s3566_s20 = inlined_call_operand.vmem [shape: f32[1,32], index: 20, kind: input, shape index: {}]   ;;  %s3567_s21 = inlined_call_operand.vmem [shape: f32[32,32], index: 21, kind: input, shape index: {}]   ;;  %s3568_s22 = inlined_call_operand.vmem [shape: f32[1,32], index: 22, kind: input, shape index: {}]   ;;  %s3569_s23 = inlined_call_operand.vmem [shape: f32[32,128], index: 23, kind: input, shape index: {}]   ;;  %s3570_s24 = inlined_call_operand.vmem [shape: f32[1,128], index: 24, kind: input, shape index: {}]   ;;  %s3571_s25 = inlined_call_operand.hbm [shape: f32[1024,128], index: 25, kind: output, shape index: {}]  }
   0x1   :  { %3585 = sst [smem:[#allocation11_spill]] %s3546_s0 }
   0x2   :  { %3586 = sst [smem:[#allocation12_spill]] %s3547_s1 }
   0x3   :  { %3587 = sst [smem:[#allocation13_spill]] %s3548_s2 }
   0x4   :  { %3588 = sst [smem:[#allocation14_spill]] %s3549_s3 }
   0x5   :  { %3589 = sst [smem:[#allocation15_spill]] %s3550_s4 }
   0x6   :  { %3590 = sst [smem:[#allocation16_spill]] %s3551_s5 }
   0x7   :  { %3591 = sst [smem:[#allocation17_spill]] %s3552_s6 }
   0x8   :  { %3592 = sst [smem:[#allocation18_spill]] %s3553_s7 }
   0x9   :  { %3593 = sst [smem:[#allocation19_spill]] %s3554_s8 }
   0xa   :  { %3594 = sst [smem:[#allocation20_spill]] %s3555_s9 }
   0xb   :  { %3595 = sst [smem:[#allocation21_spill]] %s3556_s10 }
   0xc   :  { %3596 = sst [smem:[#allocation22_spill]] %s3557_s11 }
   0xd   :  { %3597 = sst [smem:[#allocation23_spill]] %s3558_s12 }
   0xe   :  { %3598 = sst [smem:[#allocation24_spill]] %s3559_s13 }
   0xf   :  { %3599 = sst [smem:[#allocation25_spill]] %s3571_s25 }
  0x10   :  { %30 = vsyncpa [#allocation3], 0 }
  0x11   :  { %32 = vsyncpa [#allocation3 + $0x1], 0  ;;  %s2850_s29 = smov 0   ;;  %s2852_s2 = smov 0  }
  0x12   :  { %s2854_s6 = smov 0   ;;  %s2856_s30 = smov 0  }
  0x13 LB: > { %3600 = sst [smem:[#allocation5_spill]] %s2703_s29  ;;  %s2871_s7 = sadd.s32 4294967295, %s2715_s30   ;;  %s2715_s30 = sphi %s2856_s30, %s3627_s30   ;;  %s2711_s6 = sphi %s2854_s6, %s3629_s6   ;;  %s2707_s2 = sphi %s2852_s2, %s3631_s2   ;;  %s2703_s29 = sphi %s2850_s29, %s3630_s29  }
  0x14   : > { %3601 = sst [smem:[#allocation6_spill]] %s2711_s6  ;;  %s2410_s3 = sadd.s32 4294967294, %s2715_s30  }
  0x15   : > { %3602 = sst [smem:[#allocation7_spill]] %s2715_s30  ;;  %s2875_s26 = sadd.s32 1, %s2715_s30  }
  0x16   : > { %3603 = sst [smem:[#allocation8_spill]] %s2875_s26  ;;  %s575_s1 = sadd.s32 1, %s2711_s6 }
  0x17   : > { %s572_s8 = ssub.s32 %s2715_s30, %s2875_s26  ;;  %p585_p0 = scmp.ne.s32.totalorder %s2711_s6, %s2707_s2 }
  0x18   : > { %p573_p1 = scmp.eq.s32.totalorder %s572_s8, 0  ;;  %p586_p2 = scmp.eq.s32.totalorder %s2871_s7, 3 }
  0x19   : > { %p591_p3 = scmp.ne.s32.totalorder %s2707_s2, %s2703_s29  ;;  %p592_p4 = scmp.eq.s32.totalorder %s2410_s3, 3 }
  0x1a   : > { %s2886_s27 = scalar_select %p573_p1, %s2711_s6, %s575_s1  }
  0x1b   : > { %p2888_p5 = por %p586_p2, %p585_p0  ;;  %p2892_p6 = por %p592_p4, %p591_p3 }
  0x1c   : > { %3604 = sst [smem:[#allocation9_spill]] %s2886_s27  ;;  %p2413_p7 = scmp.ge.s32.totalorder %s2715_s30, 1 }
  0x1d   : > { %s3606_s28 = scalar_select %p2892_p6, 1, 0 }
  0x1e   : > { %p691_p8 = scmp.lt.s32.totalorder %s2715_s30, 5 }
  0x1f   : > { %3607 = sst [smem:[#allocation10_spill]] %s3606_s28 }
  0x20   : > { %p692_p9 = pnand %p2413_p7, %p691_p8 }
  0x21   : > { %s3608_s0 = sld [smem:[#allocation14_spill]] (!%p692_p9)  ;;  %s2415_s5 = sshll.u32 (!%p692_p9), %s2871_s7, 5 }
  0x22   : > { %695 = sbr.rel (%p692_p9) target bundleno = 1393 (0x571), region = 120  ;;  %s3609_s8 = sld [smem:[#allocation11_spill]] (!%p692_p9) }
  0x23   : > { %s3610_s26 = sld [smem:[#allocation12_spill]] (!%p692_p9)  ;;  %p760_p10 = scmp.lt.s32.totalorder (!%p692_p9), %s2415_s5, 127 }
  0x24   : > { %s3611_s29 = sld [smem:[#allocation17_spill]] (!%p692_p9) }
  0x25   : > { %s3613_s3 = sld [smem:[#allocation19_spill]] (!%p692_p9) }
  0x26   : > { %s3614_s6 = sld [smem:[#allocation15_spill]] (!%p692_p9) }
  0x27   : > { %v786_v0 = vld [vmem:[%s3608_s0] sm:$0x3]  ;;  %vm794_vm0 = vcmask 1041408   ;;  %vm787_vm1 = vcmask 15360   ;;  %v2717_v2 = vmov 0   ;;  %s3615_s28 = sld [smem:[#allocation16_spill]]  ;;  %v906_v37 = vlaneseq }
  0x28   : > { %v766_v1 = vld [vmem:[%s3609_s8] sm:$0xff]  ;;  %2417 = vmatpush.msk.msra.mxu0 %vm794_vm0, %v786_v0  ;;  %2640 = vset.pattern.permute.xlu0 %v2717_v2  ;;  %v767_v4 = vld [vmem:[%s3609_s8 + $0x8] sm:$0xff]  ;;  %vm837_vm2 = vcmask 261120   ;;  %s3616_s30 = sld [smem:[#allocation18_spill]]  ;;  %vm917_vm4 = vcmask 130048   ;;  %s3633_s5 = smov (!%p760_p10, %s2415_s5), 127 }
  0x29   : > { %v768_v3 = vld [vmem:[%s3610_s26] sm:$0xff]  ;;  %2418 = vmatmul.msk.f32.vlgmr.msra.gmra.mxu0 %vm787_vm1, %v766_v1  ;;  %v769_v5 = vld [vmem:[%s3610_s26 + $0x8] sm:$0xff]  ;;  %s3617_s10 = sld [smem:[#allocation21_spill]]  ;;  %v907_v41 = vshrl.u32 %v906_v37, 7  ;;  %s2416_s0 = sshll.u32 %s3633_s5, 3  ;;  %v1309_v63 = vld [vmem:[%s3562_s16 + $0x18] sm:$0xff] }
  0x2a   : > { %773 = vperm.xlu0 %2640, %v768_v3   ;;  %s3612_s25 = smov %s3611_s29  ;;  %v832_v6 = vld [vmem:[%s3611_s29 + $0x18] sm:$0xff]  ;;  %v1003_v38 = vld [vmem:[%s3563_s17 + $0x8] sm:$0xff]  ;;  %v1002_v39 = vld [vmem:[%s3563_s17] sm:$0xff]  ;;  %s3620_s12 = sld [smem:[#allocation23_spill]] }
  0x2b   : > { %856 = vmatpush.msra.mxu1 %v832_v6  ;;  %v831_v7 = vld [vmem:[%s3612_s25 + $0x10] sm:$0xff]  ;;  %v830_v8 = vld [vmem:[%s3612_s25 + $0x8] sm:$0xff]  ;;  %v829_v9 = vld [vmem:[%s3612_s25] sm:$0xff]  ;;  %v908_v43 = vadd.s32 8, %v907_v41  ;;  %s3621_s11 = sld [smem:[#allocation22_spill]]  ;;  %s756_s5 = sand.u32 1, %s2707_s2  }
  0x2c   : > { %v872_v10 = vld [vmem:[%s3613_s3 + $0x18] sm:$0xff]  ;;  %v2641_v11 = vld [vmem:[%s3614_s6] ss:$0 sm:$0xff]  ;;  %v871_v25 = vld [vmem:[%s3613_s3 + $0x10] sm:$0xff]  ;;  %s3619_s6 = sld [smem:[#allocation13_spill]]  ;;  %s2333_s1 = scalar_lea.sflag [#allocation3], %s756_s5 }
  0x2d   : > { %857 = vmatpush.msra.mxu1 %v831_v7  ;;  %895 = vmatpush.msra.mxu2 %v872_v10  ;;  %v2642_v14 = vld [vmem:[%s3615_s28] ss:$0 sm:$0xff]  ;;  %v870_v26 = vld [vmem:[%s3613_s3 + $0x8] sm:$0xff]  ;;  %s3618_s28 = sld [smem:[#allocation20_spill]]  ;;  %vm910_vm3 = vcmp.lt.s32.totalorder %v908_v43, 10  ;;  %v1308_v0 = vld [vmem:[%s3562_s16 + $0x10] sm:$0xff] }
  0x2e   : > { %v869_v27 = vld [vmem:[%s3613_s3] sm:$0xff]  ;;  %v1307_v3 = vld [vmem:[%s3562_s16 + $0x8] sm:$0xff]  ;;  %s3622_s13 = sld [smem:[#allocation24_spill]] }
  0x2f   : > { %858 = vmatpush.msra.mxu1 %v830_v8  ;;  %896 = vmatpush.msra.mxu2 %v871_v25  ;;  %v2643_v28 = vld [vmem:[%s3616_s30] ss:$0 sm:$0xff]  ;;  %v929_v35 = vld [vmem:[%s3617_s10 + $0x8] sm:$0xff]  ;;  %s2594_s30 = sshll.u32 %s2871_s7, 8  ;;  %s3623_s8 = sld [smem:[#allocation25_spill]] }
  0x30   : > { %v928_v36 = vld [vmem:[%s3617_s10] sm:$0xff]  ;;  %948 = vmatpush.msrb.mxu0 %v929_v35  ;;  %v958_v6 = vld [vmem:[%s3620_s12 + $0x18] sm:$0xff] }
  0x31   : > { %2419 = vmatmul.msk.f32.gmra.mxu0 %vm787_vm1, %v767_v4  ;;  %859 = vmatpush.msra.mxu1 %v829_v9  ;;  %v2971_v44 = vld [vmem:[%s3560_s14] sm:$0x3] }
  0x32   : > { %778 = vperm.xlu0 %2640, %v769_v5   ;;  %897 = vmatpush.msra.mxu2 %v870_v26  ;;  %s2987_s27 = scalar_lea.vmem %s3619_s6, %s2416_s0  ;;  %s2414_s0 = sshll.u32 %s756_s5, 8 }
  0x33   : > { %949 = vmatpush.msrb.mxu0 %v928_v36  ;;  %v2644_v42 = vld [vmem:[%s3618_s28] ss:$0 sm:$0xff]  ;;  %2595 = vmatpush.msk.msrb.mxu1 %vm794_vm0, %v2971_v44  ;;  %v1026_v60 = vld [vmem:[%s2987_s27 + $0x8] sm:$0xff]  ;;  %v1027_v61 = vld [vmem:[%s2987_s27 + $0x10] sm:$0xff]  ;;  %s3404_s6 = scalar_lea.vmem [#allocation2], %s2414_s0 }
  0x34   : > { %898 = vmatpush.msra.mxu2 %v869_v27  ;;  %v1025_v59 = vld [vmem:[%s2987_s27] sm:$0xff]  ;;  %v1032_v62 = vld [vmem:[%s2987_s27 + $0x38] sm:$0xff]  ;;  %v1034_v5 = vld [vmem:[%s2987_s27 + $0x48] sm:$0xff]  ;;  %975 = vmatpush.msra.mxu3 %v958_v6  ;;  %s2345_s0 = sshll.u32 %s3404_s6, 4  ;;  %s2346_s0 = int_to_ptr.vmem [resolvable:$true] %s2345_s0 }
  0x35   : > { %1019 = vmatpush.msra.mxu0 %v1003_v38  ;;  %v1028_v1 = vld [vmem:[%s2987_s27 + $0x18] sm:$0xff]  ;;  %v1033_v2 = vld [vmem:[%s2987_s27 + $0x40] sm:$0xff]  ;;  %v1030_v7 = vld [vmem:[%s2987_s27 + $0x28] sm:$0xff]  ;;  %s2344_s9 = scalar_lea.hbm %s3623_s8, %s2594_s30  ;;  %s2673_s28 = scalar_lea.hbm %s3623_s8, 1024 }
  0x36   : > { %2596 = vmatpush.msk.msrb.mxu2 %vm794_vm0, %v2971_v44  ;;  %v1029_v4 = vld [vmem:[%s2987_s27 + $0x20] sm:$0xff]  ;;  %v1035_v8 = vld [vmem:[%s2987_s27 + $0x50] sm:$0xff]  ;;  %v1036_v10 = vld [vmem:[%s2987_s27 + $0x58] sm:$0xff]  ;;  %s2347_s29 = sshll.u32 %s2344_s9, 4  ;;  %s2348_s29 = int_to_ptr.hbm [resolvable:$true] %s2347_s29 }
  0x37   : > { %1020 = vmatpush.msra.mxu0 %v1002_v39  ;;  %v1031_v9 = vld [vmem:[%s2987_s27 + $0x30] sm:$0xff]  ;;  %v1044_v26 = vld [vmem:[%s2987_s27 + $0x98] sm:$0xff]  ;;  %s2667_s7 = sshra.s32 %s2348_s29, 4  ;;  %s2668_s7 = int_to_ptr.hbm [resolvable:$true] %s2667_s7 }
  0x38   : > { %v1047_v37 = vld [vmem:[%s2987_s27 + $0xb0] sm:$0xff]  ;;  %v1048_v41 = vld [vmem:[%s2987_s27 + $0xb8] sm:$0xff]  ;;  %s2669_s3 = scalar_lea.hbm %s2668_s7, 256  ;;  %p2674_p0 = scmp.lt.s32.totalorder %s2668_s7, %s3623_s8 }
  0x39   : > { %p2670_p11 = scmp.ne.s32.totalorder %s2668_s7, %s2669_s3  ;;  %p2675_p1 = scmp.lt.s32.totalorder %s2673_s28, %s2669_s3 }
  0x3b   : > { %p2671_p12 = pnand %p2670_p11, %p2888_p5  ;;  %p2676_p2 = por %p2675_p1, %p2674_p0 }
  0x3d   : > { %p2672_p13 = pneg %p2671_p12 }
  0x3f   : > { %p2677_p3 = pnand %p2676_p2, %p2672_p13 }
  0x9c   : > { %v774_v12 = vpop.permute.xlu0 %773 }
  0x9d   : > { %v784_v13 = vmul.f32 %v2641_v11, %v774_v12  ;;  %v1038_v12 = vld [vmem:[%s2987_s27 + $0x68] sm:$0xff] }
  0xa4   : > { %v779_v18 = vpop.permute.xlu0 %778 }
  0xa5   : > { %v785_v20 = vmul.f32 %v2641_v11, %v779_v18  ;;  %v1037_v11 = vld [vmem:[%s2987_s27 + $0x60] sm:$0xff] }
  0xa6   : > { %v815_v15 = vpop.f32.mrf.mxu0  ;;  %v1306_v18 = vld [vmem:[%s3562_s16] sm:$0xff] }
  0xa7   : > { %v816_v16 = vadd.f32 %v815_v15, %v784_v13  ;;  %v957_v13 = vld [vmem:[%s3620_s12 + $0x10] sm:$0xff] }
  0xa8   : > { %976 = vmatpush.msra.mxu3 %v957_v13  ;;  %v1039_v15 = vld [vmem:[%s2987_s27 + $0x70] sm:$0xff]  ;;  %v1056_v13 = vld [vmem:[%s2987_s27 + $0xf8] sm:$0xff] }
  0xa9   : > { %v825_v17 = vadd.f32 %v2642_v14, %v816_v16  ;;  %v955_v16 = vld [vmem:[%s3620_s12] sm:$0xff] }
  0xab   : > { %v827_v19 = vmax.f32 %v825_v17, 0.0  ;;  %v1040_v17 = vld [vmem:[%s2987_s27 + $0x78] sm:$0xff] }
  0xad   : > { %2420 = vmatmul.msk.f32.vlgmr.msra.gmra.mxu1 %vm837_vm2, %v827_v19  ;;  %v1041_v19 = vld [vmem:[%s2987_s27 + $0x80] sm:$0xff] }
  0xae   : > { %v818_v21 = vpop.f32.mrf.mxu0  ;;  %1419 = vmatpush.msra.mxu1 %v1309_v63 }
  0xaf   : > { %v819_v22 = vadd.f32 %v818_v21, %v785_v20  ;;  %v1042_v20 = vld [vmem:[%s2987_s27 + $0x88] sm:$0xff]  ;;  %v1043_v21 = vld [vmem:[%s2987_s27 + $0x90] sm:$0xff] }
  0xb0   : > { %1420 = vmatpush.msra.mxu1 %v1308_v0 }
  0xb1   : > { %v826_v23 = vadd.f32 %v2642_v14, %v819_v22  ;;  %v956_v14 = vld [vmem:[%s3620_s12 + $0x8] sm:$0xff]  ;;  %v930_v22 = vld [vmem:[%s3621_s11] sm:$0x1] }
  0xb2   : > { %1421 = vmatpush.msra.mxu1 %v1307_v3  ;;  %977 = vmatpush.msra.mxu3 %v956_v14 }
  0xb3   : > { %v828_v24 = vmax.f32 %v826_v23, 0.0 }
  0xb4   : > { %978 = vmatpush.msra.mxu3 %v955_v16  ;;  %1422 = vmatpush.msra.mxu1 %v1306_v18 }
  0xb5   : > { %2421 = vmatmul.msk.f32.gmra.mxu1 %vm837_vm2, %v828_v24 }
  0xb6   : > { %2597 = vmatpush.msk.msrb.mxu3 %vm794_vm0, %v2971_v44 }
  0xbd   : > { %2436 = vmatmul.msk.f32.vlgmr.msrb.gmra.mxu1 %vm787_vm1, %v1032_v62  ;;  %v1554_v62 = vld [vmem:[%s3565_s19 + $0x10] sm:$0xff] }
  0xc5   : > { %2437 = vmatmul.msk.f32.gmra.mxu1 %vm787_vm1, %v1033_v2 }
  0xcd   : > { %2438 = vmatmul.msk.f32.gmra.mxu1 %vm787_vm1, %v1034_v5 }
  0xd5   : > { %2439 = vmatmul.msk.f32.gmra.mxu1 %vm787_vm1, %v1035_v8 }
  0xdd   : > { %2440 = vmatmul.msk.f32.gmra.mxu1 %vm787_vm1, %v1036_v10 }
  0xe5   : > { %2441 = vmatmul.msk.f32.gmra.mxu1 %vm787_vm1, %v1037_v11 }
  0xed   : > { %2442 = vmatmul.msk.f32.gmra.mxu1 %vm787_vm1, %v1038_v12 }
  0xf5   : > { %2443 = vmatmul.msk.f32.gmra.mxu1 %vm787_vm1, %v1039_v15  ;;  %v1552_v15 = vld [vmem:[%s3565_s19] sm:$0xff] }
 0x12a   : > { %v861_v29 = vpop.f32.mrf.mxu1 }
 0x12b   : > { %v862_v30 = vadd.f32 %v2643_v28, %v861_v29  ;;  %v3065_v29 = vld [vmem:[%s3561_s15] ss:$0 sm:$0xff] }
 0x12d   : > { %v867_v31 = vmax.f32 %v862_v30, 0.0 }
 0x12f   : > { %2422 = vmatmul.msk.f32.vlgmr.msra.gmra.mxu2 %vm837_vm2, %v867_v31 }
 0x132   : > { %v864_v32 = vpop.f32.mrf.mxu1 }
 0x133   : > { %v865_v33 = vadd.f32 %v2643_v28, %v864_v32  ;;  %v1045_v28 = vld [vmem:[%s2987_s27 + $0xa0] sm:$0xff] }
 0x135   : > { %v868_v34 = vmax.f32 %v865_v33, 0.0  ;;  %v1046_v33 = vld [vmem:[%s2987_s27 + $0xa8] sm:$0xff] }
 0x137   : > { %2423 = vmatmul.msk.f32.gmra.mxu2 %vm837_vm2, %v868_v34 }
 0x13f   : > { %2444 = vmatmul.msk.f32.vlgmr.msrb.gmra.mxu2 %vm787_vm1, %v1040_v17 }
 0x147   : > { %2445 = vmatmul.msk.f32.gmra.mxu2 %vm787_vm1, %v1041_v19 }
 0x14f   : > { %2446 = vmatmul.msk.f32.gmra.mxu2 %vm787_vm1, %v1042_v20 }
 0x157   : > { %2447 = vmatmul.msk.f32.gmra.mxu2 %vm787_vm1, %v1043_v21 }
 0x15f   : > { %2448 = vmatmul.msk.f32.gmra.mxu2 %vm787_vm1, %v1044_v26 }
 0x167   : > { %2449 = vmatmul.msk.f32.gmra.mxu2 %vm787_vm1, %v1045_v28 }
 0x16f   : > { %2450 = vmatmul.msk.f32.gmra.mxu2 %vm787_vm1, %v1046_v33  ;;  %v1004_v33 = vld [vmem:[%s3564_s18] sm:$0x1] }
 0x177   : > { %2451 = vmatmul.msk.f32.gmra.mxu2 %vm787_vm1, %v1047_v37 }
 0x1b2   : > { %v900_v40 = vpop.f32.mrf.mxu2 }
 0x1b3   : > { %v901_v45 = vadd.f32 %v2644_v42, %v900_v40 }
 0x1b5   : > { %v918_v49 = vsel %vm917_vm4, %v901_v45, 0.0 }
 0x1ba   : > { %v903_v46 = vpop.f32.mrf.mxu2 }
 0x1bb   : > { %v904_v47 = vadd.f32 %v2644_v42, %v903_v46 }
 0x1bd   : > { %v916_v48 = vsel %vm910_vm3, %v904_v47, 0.0 }
 0x1be   : > { %v919_v50 = vsel %vm917_vm4, %v916_v48, 0.0  ;;  %v1050_v48 = vld [vmem:[%s2987_s27 + $0xc8] sm:$0xff] }
 0x1bf   : > { %v920_v51 = vadd.f32 %v919_v50, %v918_v49  ;;  %v1199_v50 = vpop.f32.mrf.mxu1 }
 0x1c1   : > { %v921_v52 = vrot.slane %v920_v51, 4 }
 0x1c2   : > { %v1223_v21 = vpop.f32.mrf.mxu2 }
 0x1c3   : > { %v922_v53 = vadd.f32 %v921_v52, %v920_v51  ;;  %v1555_v51 = vld [vmem:[%s3565_s19 + $0x18] sm:$0xff] }
 0x1c4   : > { %1668 = vmatpush.msra.mxu2 %v1555_v51 }
 0x1c5   : > { %v923_v54 = vrot.slane %v922_v53, 2 }
 0x1c6   : > { %1669 = vmatpush.msra.mxu2 %v1554_v62 }
 0x1c7   : > { %v924_v55 = vadd.f32 %v923_v54, %v922_v53  ;;  %v1051_v54 = vld [vmem:[%s2987_s27 + $0xd0] sm:$0xff] }
 0x1c9   : > { %v925_v56 = vrot.slane %v924_v55, 1 }
 0x1ca   : > { %v1226_v26 = vpop.f32.mrf.mxu2 }
 0x1cb   : > { %v926_v57 = vadd.f32 %v925_v56, %v924_v55  ;;  %v1202_v56 = vpop.f32.mrf.mxu1 }
 0x1cc   : > { %v1203_v2 = vadd.f32 %v3065_v29, %v1202_v56 }
 0x1cd   : > { %v927_v58 = vmul.f32 0.1, %v926_v57 }
 0x1ce   : > { %v1282_v3 = vmax.f32 %v1203_v2, 0.0 }
 0x1cf   : > { %2424 = vmatmul.msk.f32.vlgmr.msrb.gmra.mxu0 %vm917_vm4, %v927_v58 }
 0x1d0   : > { %2428 = vmatpush.msk.msrb.mxu0 %vm794_vm0, %v2971_v44  ;;  %v1049_v44 = vld [vmem:[%s2987_s27 + $0xc0] sm:$0xff] }
 0x1d3   : > { %v1205_v63 = vpop.f32.mrf.mxu1 }
 0x1d4   : > { %v1206_v6 = vadd.f32 %v3065_v29, %v1205_v63 }
 0x1d6   : > { %v1283_v8 = vmax.f32 %v1206_v6, 0.0 }
 0x1d7   : > { %2427 = vmatmul.msk.f32.vlgmr.msra.gmra.mxu0 %vm917_vm4, %v927_v58 }
 0x1db   : > { %v1208_v5 = vpop.f32.mrf.mxu1 }
 0x1dc   : > { %v1209_v11 = vadd.f32 %v3065_v29, %v1208_v5 }
 0x1de   : > { %v1284_v12 = vmax.f32 %v1209_v11, 0.0 }
 0x1df   : > { %2429 = vmatmul.msk.f32.vlgmr.msrb.gmra.mxu0 %vm787_vm1, %v1025_v59  ;;  %v1052_v59 = vld [vmem:[%s2987_s27 + $0xd8] sm:$0xff] }
 0x1e3   : > { %v1211_v10 = vpop.f32.mrf.mxu1 }
 0x1e4   : > { %v1212_v14 = vadd.f32 %v3065_v29, %v1211_v10 }
 0x1e6   : > { %v1285_v17 = vmax.f32 %v1212_v14, 0.0 }
 0x1e7   : > { %2430 = vmatmul.msk.f32.gmra.mxu0 %vm787_vm1, %v1026_v60 }
 0x1eb   : > { %v1214_v16 = vpop.f32.mrf.mxu1 }
 0x1ec   : > { %v1215_v18 = vadd.f32 %v3065_v29, %v1214_v16  ;;  %v1804_v16 = vld [vmem:[%s3567_s21 + $0x18] sm:$0xff] }
 0x1ed   : > { %1917 = vmatpush.msra.mxu0 %v1804_v16 }
 0x1ee   : > { %v1286_v20 = vmax.f32 %v1215_v18, 0.0 }
 0x1ef   : > { %2431 = vmatmul.msk.f32.gmra.mxu0 %vm787_vm1, %v1027_v61  ;;  %v1200_v61 = vadd.f32 %v3065_v29, %v1199_v50 }
 0x1f1   : > { %v1281_v0 = vmax.f32 %v1200_v61, 0.0 }
 0x1f3   : > { %v1217_v19 = vpop.f32.mrf.mxu1 }
 0x1f7   : > { %2432 = vmatmul.msk.f32.gmra.mxu0 %vm787_vm1, %v1028_v1  ;;  %v1053_v1 = vld [vmem:[%s2987_s27 + $0xe0] sm:$0xff] }
 0x1ff   : > { %2433 = vmatmul.msk.f32.gmra.mxu0 %vm787_vm1, %v1029_v4  ;;  %v1054_v4 = vld [vmem:[%s2987_s27 + $0xe8] sm:$0xff] }
 0x207   : > { %2434 = vmatmul.msk.f32.gmra.mxu0 %vm787_vm1, %v1030_v7  ;;  %v1553_v7 = vld [vmem:[%s3565_s19 + $0x8] sm:$0xff] }
 0x208   : > { %1670 = vmatpush.msra.mxu2 %v1553_v7 }
 0x20a   : > { %1671 = vmatpush.msra.mxu2 %v1552_v15 }
 0x20f   : > { %2435 = vmatmul.msk.f32.gmra.mxu0 %vm787_vm1, %v1031_v9  ;;  %v1055_v9 = vld [vmem:[%s2987_s27 + $0xf0] sm:$0xff] }
 0x24c   : > { %v951_v23 = vpop.f32.mrf.mxu0 }
 0x24d   : > { %v952_v24 = vadd.f32 %v951_v23, %v930_v22  ;;  %v1218_v22 = vadd.f32 %v3065_v29, %v1217_v19 }
 0x24f   : > { %v954_v25 = vmax.f32 %v952_v24, 0.0  ;;  %v1287_v23 = vmax.f32 %v1218_v22, 0.0  ;;  %v1220_v24 = vpop.f32.mrf.mxu1 }
 0x251   : > { %2425 = vmatmul.msk.f32.vlgmr.msra.gmra.mxu3 %vm837_vm2, %v954_v25  ;;  %v1221_v25 = vadd.f32 %v3065_v29, %v1220_v24 }
 0x253   : > { %v1288_v28 = vmax.f32 %v1221_v25, 0.0 }
 0x254   : > { %v3059_v27 = vpop.f32.mrf.mxu0 }
 0x259   : > { %2452 = vmatmul.msk.f32.vlgmr.msrb.gmra.mxu3 %vm787_vm1, %v1048_v41 }
 0x25c   : > { %v1178_v30 = vpop.f32.mrf.mxu0 }
 0x25d   : > { %v1179_v31 = vadd.f32 %v3065_v29, %v1178_v30  ;;  %v1224_v30 = vadd.f32 %v3065_v29, %v1223_v21 }
 0x25f   : > { %v1274_v32 = vmax.f32 %v1179_v31, 0.0  ;;  %v1229_v31 = vpop.f32.mrf.mxu2 }
 0x261   : > { %2461 = vmatmul.msk.f32.vlgmr.msra.gmra.mxu1 %vm837_vm2, %v1274_v32  ;;  %2453 = vmatmul.msk.f32.gmra.mxu3 %vm787_vm1, %v1049_v44  ;;  %v1289_v32 = vmax.f32 %v1224_v30, 0.0  ;;  %v1803_v30 = vld [vmem:[%s3567_s21 + $0x10] sm:$0xff] }
 0x262   : > { %1918 = vmatpush.msra.mxu0 %v1803_v30 }
 0x264   : > { %v1181_v34 = vpop.f32.mrf.mxu0 }
 0x265   : > { %v1182_v35 = vadd.f32 %v3065_v29, %v1181_v34  ;;  %v1023_v34 = vadd.f32 %v3059_v27, %v1004_v33 }
 0x267   : > { %v1275_v36 = vmax.f32 %v1182_v35, 0.0  ;;  %v1227_v35 = vadd.f32 %v3065_v29, %v1226_v26 }
 0x269   : > { %2462 = vmatmul.msk.f32.gmra.mxu1 %vm837_vm2, %v1275_v36  ;;  %2454 = vmatmul.msk.f32.gmra.mxu3 %vm787_vm1, %v1050_v48  ;;  %v3139_v36 = vperm.slane %v1023_v34, 0  ;;  %v1290_v37 = vmax.f32 %v1227_v35, 0.0 }
 0x26c   : > { %v1184_v38 = vpop.f32.mrf.mxu0 }
 0x26d   : > { %v1185_v39 = vadd.f32 %v3065_v29, %v1184_v38 }
 0x26f   : > { %v1276_v40 = vmax.f32 %v1185_v39, 0.0  ;;  %v1232_v39 = vpop.f32.mrf.mxu2 }
 0x271   : > { %2463 = vmatmul.msk.f32.gmra.mxu1 %vm837_vm2, %v1276_v40  ;;  %2455 = vmatmul.msk.f32.gmra.mxu3 %vm787_vm1, %v1051_v54 }
 0x274   : > { %v1187_v42 = vpop.f32.mrf.mxu0 }
 0x275   : > { %v1188_v43 = vadd.f32 %v3065_v29, %v1187_v42  ;;  %v1230_v42 = vadd.f32 %v3065_v29, %v1229_v31 }
 0x277   : > { %v1277_v45 = vmax.f32 %v1188_v43, 0.0  ;;  %v1291_v43 = vmax.f32 %v1230_v42, 0.0 }
 0x279   : > { %2464 = vmatmul.msk.f32.gmra.mxu1 %vm837_vm2, %v1277_v45  ;;  %2456 = vmatmul.msk.f32.gmra.mxu3 %vm787_vm1, %v1052_v59  ;;  %v1235_v45 = vpop.f32.mrf.mxu2 }
 0x27c   : > { %v1190_v46 = vpop.f32.mrf.mxu0 }
 0x27d   : > { %v1191_v47 = vadd.f32 %v3065_v29, %v1190_v46 }
 0x27f   : > { %v1278_v49 = vmax.f32 %v1191_v47, 0.0  ;;  %v1233_v47 = vadd.f32 %v3065_v29, %v1232_v39 }
 0x281   : > { %2465 = vmatmul.msk.f32.gmra.mxu1 %vm837_vm2, %v1278_v49  ;;  %2457 = vmatmul.msk.f32.gmra.mxu3 %vm787_vm1, %v1053_v1  ;;  %v1292_v48 = vmax.f32 %v1233_v47, 0.0 }
 0x284   : > { %v1193_v52 = vpop.f32.mrf.mxu0 }
 0x285   : > { %v1194_v53 = vadd.f32 %v3065_v29, %v1193_v52  ;;  %v1236_v52 = vadd.f32 %v3065_v29, %v1235_v45 }
 0x287   : > { %v1279_v55 = vmax.f32 %v1194_v53, 0.0  ;;  %v1238_v53 = vpop.f32.mrf.mxu2  ;;  %v1293_v54 = vmax.f32 %v1236_v52, 0.0 }
 0x288   : > { %v1239_v59 = vadd.f32 %v3065_v29, %v1238_v53 }
 0x289   : > { %2466 = vmatmul.msk.f32.gmra.mxu1 %vm837_vm2, %v1279_v55  ;;  %2458 = vmatmul.msk.f32.gmra.mxu3 %vm787_vm1, %v1054_v4 }
 0x28a   : > { %v1294_v61 = vmax.f32 %v1239_v59, 0.0 }
 0x28c   : > { %v1196_v57 = vpop.f32.mrf.mxu0 }
 0x28d   : > { %v1197_v58 = vadd.f32 %v3065_v29, %v1196_v57 }
 0x28f   : > { %v1280_v60 = vmax.f32 %v1197_v58, 0.0 }
 0x291   : > { %2467 = vmatmul.msk.f32.gmra.mxu1 %vm837_vm2, %v1280_v60  ;;  %2459 = vmatmul.msk.f32.gmra.mxu3 %vm787_vm1, %v1055_v9  ;;  %v1241_v60 = vpop.f32.mrf.mxu2 }
 0x292   : > { %v1242_v2 = vadd.f32 %v3065_v29, %v1241_v60 }
 0x299   : > { %2468 = vmatmul.msk.f32.gmra.mxu1 %vm837_vm2, %v1281_v0  ;;  %2460 = vmatmul.msk.f32.gmra.mxu3 %vm787_vm1, %v1056_v13  ;;  %v1244_v5 = vpop.f32.mrf.mxu2 }
 0x29a   : > { %v1245_v9 = vadd.f32 %v3065_v29, %v1244_v5 }
 0x29c   : > { %v1296_v10 = vmax.f32 %v1245_v9, 0.0 }
 0x2a1   : > { %2469 = vmatmul.msk.f32.gmra.mxu1 %vm837_vm2, %v1282_v3  ;;  %v1295_v3 = vmax.f32 %v1242_v2, 0.0 }
 0x2a9   : > { %2470 = vmatmul.msk.f32.gmra.mxu1 %vm837_vm2, %v1283_v8 }
 0x2b1   : > { %2471 = vmatmul.msk.f32.gmra.mxu1 %vm837_vm2, %v1284_v12 }
 0x2b9   : > { %2472 = vmatmul.msk.f32.gmra.mxu1 %vm837_vm2, %v1285_v17 }
 0x2c1   : > { %2473 = vmatmul.msk.f32.gmra.mxu1 %vm837_vm2, %v1286_v20 }
 0x2c9   : > { %2474 = vmatmul.msk.f32.gmra.mxu1 %vm837_vm2, %v1287_v23 }
 0x2d1   : > { %2475 = vmatmul.msk.f32.gmra.mxu1 %vm837_vm2, %v1288_v28 }
 0x2d4   : > { %v3153_v55 = vpop.f32.mrf.mxu3 }
 0x2d9   : > { %2476 = vmatmul.msk.f32.gmra.mxu1 %vm837_vm2, %v1289_v32 }
 0x2dc   : > { %v1247_v63 = vpop.f32.mrf.mxu3 }
 0x2dd   : > { %v1248_v14 = vadd.f32 %v3065_v29, %v1247_v63 }
 0x2de   : > { %v1424_v38 = vpop.f32.mrf.mxu1 }
 0x2df   : > { %v1425_v40 = vadd.f32 %v1424_v38, %v3139_v36  ;;  %v1297_v17 = vmax.f32 %v1248_v14, 0.0 }
 0x2e1   : > { %v1520_v41 = vmax.f32 %v1425_v40, 0.0  ;;  %2477 = vmatmul.msk.f32.gmra.mxu1 %vm837_vm2, %v1290_v37 }
 0x2e3   : > { %2493 = vmatmul.msk.f32.vlgmr.msra.gmra.mxu2 %vm837_vm2, %v1520_v41 }
 0x2e4   : > { %v1250_v7 = vpop.f32.mrf.mxu3 }
 0x2e5   : > { %v1251_v21 = vadd.f32 %v3065_v29, %v1250_v7 }
 0x2e6   : > { %v1427_v27 = vpop.f32.mrf.mxu1 }
 0x2e7   : > { %v1428_v44 = vadd.f32 %v1427_v27, %v3139_v36  ;;  %v1298_v23 = vmax.f32 %v1251_v21, 0.0  ;;  %v1802_v27 = vld [vmem:[%s3567_s21 + $0x8] sm:$0xff] }
 0x2e8   : > { %1919 = vmatpush.msra.mxu0 %v1802_v27 }
 0x2e9   : > { %v1521_v46 = vmax.f32 %v1428_v44, 0.0  ;;  %2478 = vmatmul.msk.f32.gmra.mxu1 %vm837_vm2, %v1291_v43 }
 0x2eb   : > { %2494 = vmatmul.msk.f32.gmra.mxu2 %vm837_vm2, %v1521_v46 }
 0x2ec   : > { %v1253_v15 = vpop.f32.mrf.mxu3 }
 0x2ed   : > { %v1254_v28 = vadd.f32 %v3065_v29, %v1253_v15 }
 0x2ee   : > { %v1430_v49 = vpop.f32.mrf.mxu1 }
 0x2ef   : > { %v1431_v50 = vadd.f32 %v1430_v49, %v3139_v36  ;;  %v1299_v31 = vmax.f32 %v1254_v28, 0.0 }
 0x2f1   : > { %v1522_v51 = vmax.f32 %v1431_v50, 0.0  ;;  %2479 = vmatmul.msk.f32.gmra.mxu1 %vm837_vm2, %v1292_v48  ;;  %v1801_v50 = vld [vmem:[%s3567_s21] sm:$0xff] }
 0x2f2   : > { %1920 = vmatpush.msra.mxu0 %v1801_v50 }
 0x2f3   : > { %2495 = vmatmul.msk.f32.gmra.mxu2 %vm837_vm2, %v1522_v51 }
 0x2f4   : > { %v1256_v22 = vpop.f32.mrf.mxu3 }
 0x2f5   : > { %v1257_v37 = vadd.f32 %v3065_v29, %v1256_v22 }
 0x2f6   : > { %v1433_v56 = vpop.f32.mrf.mxu1 }
 0x2f7   : > { %v1434_v57 = vadd.f32 %v1433_v56, %v3139_v36  ;;  %v1300_v38 = vmax.f32 %v1257_v37, 0.0 }
 0x2f9   : > { %v1523_v58 = vmax.f32 %v1434_v57, 0.0  ;;  %2480 = vmatmul.msk.f32.gmra.mxu1 %vm837_vm2, %v1293_v54 }
 0x2fb   : > { %2496 = vmatmul.msk.f32.gmra.mxu2 %vm837_vm2, %v1523_v58 }
 0x2fc   : > { %v1259_v33 = vpop.f32.mrf.mxu3 }
 0x2fd   : > { %v1260_v43 = vadd.f32 %v3065_v29, %v1259_v33 }
 0x2fe   : > { %v1436_v62 = vpop.f32.mrf.mxu1 }
 0x2ff   : > { %v1437_v0 = vadd.f32 %v1436_v62, %v3139_v36  ;;  %v1301_v44 = vmax.f32 %v1260_v43, 0.0 }
 0x301   : > { %v1524_v1 = vmax.f32 %v1437_v0, 0.0  ;;  %2481 = vmatmul.msk.f32.gmra.mxu1 %vm837_vm2, %v1294_v61 }
 0x303   : > { %2497 = vmatmul.msk.f32.gmra.mxu2 %vm837_vm2, %v1524_v1 }
 0x304   : > { %v1262_v41 = vpop.f32.mrf.mxu3 }
 0x305   : > { %v1263_v48 = vadd.f32 %v3065_v29, %v1262_v41 }
 0x306   : > { %v1439_v4 = vpop.f32.mrf.mxu1 }
 0x307   : > { %v1440_v6 = vadd.f32 %v1439_v4, %v3139_v36  ;;  %v1302_v51 = vmax.f32 %v1263_v48, 0.0 }
 0x309   : > { %v1525_v8 = vmax.f32 %v1440_v6, 0.0  ;;  %2482 = vmatmul.msk.f32.gmra.mxu1 %vm837_vm2, %v1295_v3 }
 0x30b   : > { %2498 = vmatmul.msk.f32.gmra.mxu2 %vm837_vm2, %v1525_v8 }
 0x30c   : > { %v1265_v49 = vpop.f32.mrf.mxu3 }
 0x30d   : > { %v1266_v56 = vadd.f32 %v3065_v29, %v1265_v49 }
 0x30e   : > { %v1442_v11 = vpop.f32.mrf.mxu1 }
 0x30f   : > { %v1443_v12 = vadd.f32 %v1442_v11, %v3139_v36  ;;  %v1303_v58 = vmax.f32 %v1266_v56, 0.0 }
 0x311   : > { %v1526_v13 = vmax.f32 %v1443_v12, 0.0  ;;  %2483 = vmatmul.msk.f32.gmra.mxu1 %vm837_vm2, %v1296_v10 }
 0x313   : > { %2499 = vmatmul.msk.f32.gmra.mxu2 %vm837_vm2, %v1526_v13 }
 0x314   : > { %v1268_v57 = vpop.f32.mrf.mxu3 }
 0x315   : > { %v1269_v62 = vadd.f32 %v3065_v29, %v1268_v57 }
 0x316   : > { %v1445_v18 = vpop.f32.mrf.mxu1 }
 0x317   : > { %v1446_v19 = vadd.f32 %v1445_v18, %v3139_v36  ;;  %v1304_v63 = vmax.f32 %v1269_v62, 0.0 }
 0x319   : > { %v1527_v20 = vmax.f32 %v1446_v19, 0.0  ;;  %2484 = vmatmul.msk.f32.gmra.mxu1 %vm837_vm2, %v1297_v17 }
 0x31b   : > { %2500 = vmatmul.msk.f32.gmra.mxu2 %vm837_vm2, %v1527_v20 }
 0x31c   : > { %v1271_v1 = vpop.f32.mrf.mxu3 }
 0x31d   : > { %v1272_v4 = vadd.f32 %v3065_v29, %v1271_v1  ;;  %v3223_v29 = vld [vmem:[%s3566_s20] ss:$0 sm:$0xff] }
 0x31e   : > { %v1448_v24 = vpop.f32.mrf.mxu1 }
 0x31f   : > { %v1449_v25 = vadd.f32 %v1448_v24, %v3139_v36  ;;  %v1305_v5 = vmax.f32 %v1272_v4, 0.0 }
 0x321   : > { %v1528_v26 = vmax.f32 %v1449_v25, 0.0  ;;  %2485 = vmatmul.msk.f32.gmra.mxu1 %vm837_vm2, %v1298_v23 }
 0x323   : > { %2501 = vmatmul.msk.f32.gmra.mxu2 %vm837_vm2, %v1528_v26 }
 0x326   : > { %v1451_v32 = vpop.f32.mrf.mxu1 }
 0x327   : > { %v1452_v34 = vadd.f32 %v1451_v32, %v3139_v36 }
 0x329   : > { %v1529_v35 = vmax.f32 %v1452_v34, 0.0  ;;  %2486 = vmatmul.msk.f32.gmra.mxu1 %vm837_vm2, %v1299_v31 }
 0x32b   : > { %2502 = vmatmul.msk.f32.gmra.mxu2 %vm837_vm2, %v1529_v35 }
 0x32e   : > { %v1454_v39 = vpop.f32.mrf.mxu1 }
 0x32f   : > { %v1455_v40 = vadd.f32 %v1454_v39, %v3139_v36 }
 0x331   : > { %v1530_v42 = vmax.f32 %v1455_v40, 0.0  ;;  %2487 = vmatmul.msk.f32.gmra.mxu1 %vm837_vm2, %v1300_v38 }
 0x333   : > { %2503 = vmatmul.msk.f32.gmra.mxu2 %vm837_vm2, %v1530_v42 }
 0x336   : > { %v1457_v45 = vpop.f32.mrf.mxu1 }
 0x337   : > { %v1458_v46 = vadd.f32 %v1457_v45, %v3139_v36 }
 0x339   : > { %v1531_v47 = vmax.f32 %v1458_v46, 0.0  ;;  %2488 = vmatmul.msk.f32.gmra.mxu1 %vm837_vm2, %v1301_v44  ;;  %v2086_v44 = vld [vmem:[%s3569_s23 + $0x18] sm:$0xff] }
 0x33a   : > { %2199 = vmatpush.msra.mxu3 %v2086_v44 }
 0x33b   : > { %2504 = vmatmul.msk.f32.gmra.mxu2 %vm837_vm2, %v1531_v47 }
 0x33e   : > { %v1460_v52 = vpop.f32.mrf.mxu1 }
 0x33f   : > { %v1461_v53 = vadd.f32 %v1460_v52, %v3139_v36 }
 0x341   : > { %v1532_v54 = vmax.f32 %v1461_v53, 0.0  ;;  %2489 = vmatmul.msk.f32.gmra.mxu1 %vm837_vm2, %v1302_v51 }
 0x343   : > { %2505 = vmatmul.msk.f32.gmra.mxu2 %vm837_vm2, %v1532_v54 }
 0x346   : > { %v1463_v59 = vpop.f32.mrf.mxu1 }
 0x347   : > { %v1464_v60 = vadd.f32 %v1463_v59, %v3139_v36 }
 0x349   : > { %v1533_v61 = vmax.f32 %v1464_v60, 0.0  ;;  %2490 = vmatmul.msk.f32.gmra.mxu1 %vm837_vm2, %v1303_v58  ;;  %v2085_v58 = vld [vmem:[%s3569_s23 + $0x10] sm:$0xff] }
 0x34a   : > { %2200 = vmatpush.msra.mxu3 %v2085_v58 }
 0x34b   : > { %2506 = vmatmul.msk.f32.gmra.mxu2 %vm837_vm2, %v1533_v61 }
 0x34e   : > { %v1466_v0 = vpop.f32.mrf.mxu1 }
 0x34f   : > { %v1467_v2 = vadd.f32 %v1466_v0, %v3139_v36 }
 0x351   : > { %v1534_v3 = vmax.f32 %v1467_v2, 0.0  ;;  %2491 = vmatmul.msk.f32.gmra.mxu1 %vm837_vm2, %v1304_v63 }
 0x353   : > { %2507 = vmatmul.msk.f32.gmra.mxu2 %vm837_vm2, %v1534_v3 }
 0x356   : > { %v1469_v6 = vpop.f32.mrf.mxu1 }
 0x357   : > { %v1470_v7 = vadd.f32 %v1469_v6, %v3139_v36 }
 0x359   : > { %v1535_v8 = vmax.f32 %v1470_v7, 0.0  ;;  %2492 = vmatmul.msk.f32.gmra.mxu1 %vm837_vm2, %v1305_v5  ;;  %v2084_v7 = vld [vmem:[%s3569_s23 + $0x8] sm:$0xff] }
 0x35a   : > { %2201 = vmatpush.msra.mxu3 %v2084_v7 }
 0x35b   : > { %2508 = vmatmul.msk.f32.gmra.mxu2 %vm837_vm2, %v1535_v8 }
 0x35e   : > { %v1472_v9 = vpop.f32.mrf.mxu1 }
 0x35f   : > { %v1473_v10 = vadd.f32 %v1472_v9, %v3139_v36 }
 0x361   : > { %v1536_v11 = vmax.f32 %v1473_v10, 0.0 }
 0x363   : > { %2509 = vmatmul.msk.f32.gmra.mxu2 %vm837_vm2, %v1536_v11 }
 0x366   : > { %v1475_v12 = vpop.f32.mrf.mxu1  ;;  %v1673_v13 = vpop.f32.mrf.mxu2 }
 0x367   : > { %v1476_v14 = vadd.f32 %v1475_v12, %v3139_v36  ;;  %v1674_v15 = vadd.f32 %v3223_v29, %v1673_v13 }
 0x369   : > { %v1537_v16 = vmax.f32 %v1476_v14, 0.0  ;;  %v1769_v17 = vmax.f32 %v1674_v15, 0.0  ;;  %v959_v14 = vld [vmem:[%s3622_s13] sm:$0x1] }
 0x36b   : > { %2510 = vmatmul.msk.f32.gmra.mxu2 %vm837_vm2, %v1537_v16  ;;  %2525 = vmatmul.msk.f32.vlgmr.msra.gmra.mxu0 %vm837_vm2, %v1769_v17  ;;  %v981_v17 = vadd.f32 %v3153_v55, %v959_v14 }
 0x36e   : > { %v1478_v18 = vpop.f32.mrf.mxu1  ;;  %v1676_v19 = vpop.f32.mrf.mxu2 }
 0x36f   : > { %v1479_v20 = vadd.f32 %v1478_v18, %v3139_v36  ;;  %v1677_v21 = vadd.f32 %v3223_v29, %v1676_v19 }
 0x371   : > { %v1538_v22 = vmax.f32 %v1479_v20, 0.0  ;;  %v1770_v23 = vmax.f32 %v1677_v21, 0.0 }
 0x373   : > { %2511 = vmatmul.msk.f32.gmra.mxu2 %vm837_vm2, %v1538_v22  ;;  %2526 = vmatmul.msk.f32.gmra.mxu0 %vm837_vm2, %v1770_v23  ;;  %v2426_v22 = vmul.f32 -1.442695, %v981_v17  ;;  %v2083_v23 = vld [vmem:[%s3569_s23] sm:$0xff] }
 0x374   : > { %2202 = vmatpush.msra.mxu3 %v2083_v23 }
 0x375   : > { %2649 = vpow2.f32 %v2426_v22 }
 0x376   : > { %v1481_v24 = vpop.f32.mrf.mxu1  ;;  %v1679_v25 = vpop.f32.mrf.mxu2 }
 0x377   : > { %v1482_v26 = vadd.f32 %v1481_v24, %v3139_v36  ;;  %v1680_v28 = vadd.f32 %v3223_v29, %v1679_v25 }
 0x379   : > { %v1539_v30 = vmax.f32 %v1482_v26, 0.0  ;;  %v1771_v31 = vmax.f32 %v1680_v28, 0.0 }
 0x37b   : > { %2512 = vmatmul.msk.f32.gmra.mxu2 %vm837_vm2, %v1539_v30  ;;  %2527 = vmatmul.msk.f32.gmra.mxu0 %vm837_vm2, %v1771_v31  ;;  %v2650_v31 = vpop.eup %2649 }
 0x37e   : > { %v1484_v32 = vpop.f32.mrf.mxu1  ;;  %v1682_v33 = vpop.f32.mrf.mxu2 }
 0x37f   : > { %v1485_v34 = vadd.f32 %v1484_v32, %v3139_v36  ;;  %v1683_v35 = vadd.f32 %v3223_v29, %v1682_v33 }
 0x381   : > { %v1540_v37 = vmax.f32 %v1485_v34, 0.0  ;;  %v1772_v38 = vmax.f32 %v1683_v35, 0.0 }
 0x383   : > { %2513 = vmatmul.msk.f32.gmra.mxu2 %vm837_vm2, %v1540_v37  ;;  %2528 = vmatmul.msk.f32.gmra.mxu0 %vm837_vm2, %v1772_v38  ;;  %v986_v37 = vadd.f32 1.0, %v2650_v31 }
 0x385   : > { %2651 = vrcp.f32 %v986_v37  ;;  %vm992_vm6 = vweird.f32 %v986_v37 }
 0x386   : > { %v1487_v39 = vpop.f32.mrf.mxu1  ;;  %v1685_v40 = vpop.f32.mrf.mxu2 }
 0x387   : > { %v1488_v41 = vadd.f32 %v1487_v39, %v3139_v36  ;;  %v1686_v42 = vadd.f32 %v3223_v29, %v1685_v40 }
 0x389   : > { %v1541_v43 = vmax.f32 %v1488_v41, 0.0  ;;  %v1773_v27 = vmax.f32 %v1686_v42, 0.0 }
 0x38b   : > { %2514 = vmatmul.msk.f32.gmra.mxu2 %vm837_vm2, %v1541_v43  ;;  %2529 = vmatmul.msk.f32.gmra.mxu0 %vm837_vm2, %v1773_v27 }
 0x38e   : > { %v1490_v45 = vpop.f32.mrf.mxu1  ;;  %v1688_v46 = vpop.f32.mrf.mxu2 }
 0x38f   : > { %v1491_v47 = vadd.f32 %v1490_v45, %v3139_v36  ;;  %v1689_v48 = vadd.f32 %v3223_v29, %v1688_v46  ;;  %v2652_v45 = vpop.eup %2651 }
 0x390   : > { %v988_v46 = vmul.f32 %v2652_v45, %v986_v37  ;;  %vm993_vm5 = vweird.f32 %v2652_v45 }
 0x391   : > { %v1542_v49 = vmax.f32 %v1491_v47, 0.0  ;;  %v1774_v50 = vmax.f32 %v1689_v48, 0.0  ;;  %vm994_vm7 = vmor %vm992_vm6, %vm993_vm5 }
 0x393   : > { %2515 = vmatmul.msk.f32.gmra.mxu2 %vm837_vm2, %v1542_v49  ;;  %2530 = vmatmul.msk.f32.gmra.mxu0 %vm837_vm2, %v1774_v50 }
 0x396   : > { %v1493_v51 = vpop.f32.mrf.mxu1  ;;  %v1691_v52 = vpop.f32.mrf.mxu2 }
 0x397   : > { %v1494_v53 = vadd.f32 %v1493_v51, %v3139_v36  ;;  %v1692_v54 = vadd.f32 %v3223_v29, %v1691_v52  ;;  %v989_v51 = vsub.f32 1.0, %v988_v46 }
 0x399   : > { %v1543_v56 = vmax.f32 %v1494_v53, 0.0  ;;  %v1775_v57 = vmax.f32 %v1692_v54, 0.0  ;;  %v990_v54 = vmul.f32 %v2652_v45, %v989_v51 }
 0x39b   : > { %2516 = vmatmul.msk.f32.gmra.mxu2 %vm837_vm2, %v1543_v56  ;;  %2531 = vmatmul.msk.f32.gmra.mxu0 %vm837_vm2, %v1775_v57  ;;  %v991_v58 = vadd.f32 %v2652_v45, %v990_v54 }
 0x39e   : > { %v1496_v59 = vpop.f32.mrf.mxu1  ;;  %v1694_v60 = vpop.f32.mrf.mxu2 }
 0x39f   : > { %v1497_v61 = vadd.f32 %v1496_v59, %v3139_v36  ;;  %v1695_v62 = vadd.f32 %v3223_v29, %v1694_v60  ;;  %v998_v60 = vand.u32 2147483648, %v986_v37 }
 0x3a1   : > { %v1544_v63 = vmax.f32 %v1497_v61, 0.0  ;;  %v1776_v0 = vmax.f32 %v1695_v62, 0.0  ;;  %v996_v61 = vand.u32 2147483647, %v986_v37  ;;  %v3306_v62 = vld [vmem:[%s3568_s22] ss:$0 sm:$0xff] }
 0x3a3   : > { %2517 = vmatmul.msk.f32.gmra.mxu2 %vm837_vm2, %v1544_v63  ;;  %2532 = vmatmul.msk.f32.gmra.mxu0 %vm837_vm2, %v1776_v0  ;;  %v999_v63 = vor.u32 1.1754944e-38, %v998_v60  ;;  %vm997_vm8 = vcmp.eq.f32.partialorder %v996_v61, 8.507059e+37 }
 0x3a6   : > { %v1499_v1 = vpop.f32.mrf.mxu1  ;;  %v1697_v2 = vpop.f32.mrf.mxu2 }
 0x3a7   : > { %v1500_v3 = vadd.f32 %v1499_v1, %v3139_v36  ;;  %v1698_v4 = vadd.f32 %v3223_v29, %v1697_v2 }
 0x3a9   : > { %v1545_v5 = vmax.f32 %v1500_v3, 0.0  ;;  %v1777_v6 = vmax.f32 %v1698_v4, 0.0 }
 0x3ab   : > { %2518 = vmatmul.msk.f32.gmra.mxu2 %vm837_vm2, %v1545_v5  ;;  %2533 = vmatmul.msk.f32.gmra.mxu0 %vm837_vm2, %v1777_v6 }
 0x3ae   : > { %v1502_v8 = vpop.f32.mrf.mxu1  ;;  %v1700_v9 = vpop.f32.mrf.mxu2 }
 0x3af   : > { %v1503_v10 = vadd.f32 %v1502_v8, %v3139_v36  ;;  %v1701_v11 = vadd.f32 %v3223_v29, %v1700_v9 }
 0x3b1   : > { %v1546_v12 = vmax.f32 %v1503_v10, 0.0  ;;  %v1778_v13 = vmax.f32 %v1701_v11, 0.0 }
 0x3b3   : > { %2519 = vmatmul.msk.f32.gmra.mxu2 %vm837_vm2, %v1546_v12  ;;  %2534 = vmatmul.msk.f32.gmra.mxu0 %vm837_vm2, %v1778_v13 }
 0x3b6   : > { %v1505_v15 = vpop.f32.mrf.mxu1  ;;  %v1703_v16 = vpop.f32.mrf.mxu2 }
 0x3b7   : > { %v1506_v18 = vadd.f32 %v1505_v15, %v3139_v36  ;;  %v1704_v19 = vadd.f32 %v3223_v29, %v1703_v16 }
 0x3b9   : > { %v1547_v20 = vmax.f32 %v1506_v18, 0.0  ;;  %v1779_v21 = vmax.f32 %v1704_v19, 0.0 }
 0x3bb   : > { %2520 = vmatmul.msk.f32.gmra.mxu2 %vm837_vm2, %v1547_v20  ;;  %2535 = vmatmul.msk.f32.gmra.mxu0 %vm837_vm2, %v1779_v21 }
 0x3be   : > { %v1508_v24 = vpop.f32.mrf.mxu1  ;;  %v1706_v25 = vpop.f32.mrf.mxu2 }
 0x3bf   : > { %v1509_v55 = vadd.f32 %v1508_v24, %v3139_v36  ;;  %v1707_v26 = vadd.f32 %v3223_v29, %v1706_v25 }
 0x3c1   : > { %v1548_v28 = vmax.f32 %v1509_v55, 0.0  ;;  %v1780_v30 = vmax.f32 %v1707_v26, 0.0 }
 0x3c3   : > { %2521 = vmatmul.msk.f32.gmra.mxu2 %vm837_vm2, %v1548_v28  ;;  %2536 = vmatmul.msk.f32.gmra.mxu0 %vm837_vm2, %v1780_v30 }
 0x3c6   : > { %v1511_v32 = vpop.f32.mrf.mxu1  ;;  %v1709_v33 = vpop.f32.mrf.mxu2 }
 0x3c7   : > { %v1512_v34 = vadd.f32 %v1511_v32, %v3139_v36  ;;  %v1710_v35 = vadd.f32 %v3223_v29, %v1709_v33 }
 0x3c9   : > { %v1549_v38 = vmax.f32 %v1512_v34, 0.0  ;;  %v1781_v39 = vmax.f32 %v1710_v35, 0.0 }
 0x3cb   : > { %2522 = vmatmul.msk.f32.gmra.mxu2 %vm837_vm2, %v1549_v38  ;;  %2537 = vmatmul.msk.f32.gmra.mxu0 %vm837_vm2, %v1781_v39 }
 0x3ce   : > { %v1514_v40 = vpop.f32.mrf.mxu1  ;;  %v1712_v41 = vpop.f32.mrf.mxu2 }
 0x3cf   : > { %v1515_v42 = vadd.f32 %v1514_v40, %v3139_v36  ;;  %v1713_v43 = vadd.f32 %v3223_v29, %v1712_v41 }
 0x3d1   : > { %v1550_v27 = vmax.f32 %v1515_v42, 0.0  ;;  %v1782_v44 = vmax.f32 %v1713_v43, 0.0 }
 0x3d3   : > { %2523 = vmatmul.msk.f32.gmra.mxu2 %vm837_vm2, %v1550_v27  ;;  %2538 = vmatmul.msk.f32.gmra.mxu0 %vm837_vm2, %v1782_v44 }
 0x3d6   : > { %v1517_v47 = vpop.f32.mrf.mxu1  ;;  %v1715_v48 = vpop.f32.mrf.mxu2 }
 0x3d7   : > { %v1518_v49 = vadd.f32 %v1517_v47, %v3139_v36  ;;  %v1716_v50 = vadd.f32 %v3223_v29, %v1715_v48  ;;  %v995_v36 = vsel %vm994_vm7, %v2652_v45, %v991_v58 }
 0x3d8   : > { %v1000_v2 = vsel %vm997_vm8, %v999_v63, %v995_v36 }
 0x3d9   : > { %v1551_v52 = vmax.f32 %v1518_v49, 0.0  ;;  %v1783_v53 = vmax.f32 %v1716_v50, 0.0  ;;  %v3310_v6 = vperm.slane %v1000_v2, 0 }
 0x3db   : > { %2524 = vmatmul.msk.f32.gmra.mxu2 %vm837_vm2, %v1551_v52  ;;  %2539 = vmatmul.msk.f32.gmra.mxu0 %vm837_vm2, %v1783_v53 }
 0x3de   : > { %v1718_v56 = vpop.f32.mrf.mxu2 }
 0x3df   : > { %v1719_v57 = vadd.f32 %v3223_v29, %v1718_v56 }
 0x3e1   : > { %v1784_v59 = vmax.f32 %v1719_v57, 0.0 }
 0x3e3   : > { %2540 = vmatmul.msk.f32.gmra.mxu0 %vm837_vm2, %v1784_v59 }
 0x3e6   : > { %v1721_v0 = vpop.f32.mrf.mxu2 }
 0x3e7   : > { %v1722_v1 = vadd.f32 %v3223_v29, %v1721_v0 }
 0x3e8   : > { %v1922_v3 = vpop.f32.mrf.mxu0 }
 0x3e9   : > { %v1785_v4 = vmax.f32 %v1722_v1, 0.0  ;;  %v1923_v5 = vadd.f32 %v3306_v62, %v1922_v3 }
 0x3eb   : > { %v2018_v7 = vmax.f32 %v1923_v5, 0.0  ;;  %2541 = vmatmul.msk.f32.gmra.mxu0 %vm837_vm2, %v1785_v4 }
 0x3ed   : > { %v2051_v8 = vmul.f32 %v3310_v6, %v2018_v7 }
 0x3ee   : > { %v1724_v9 = vpop.f32.mrf.mxu2 }
 0x3ef   : > { %v1725_v10 = vadd.f32 %v3223_v29, %v1724_v9  ;;  %2557 = vmatmul.msk.f32.vlgmr.msra.gmra.mxu3 %vm837_vm2, %v2051_v8 }
 0x3f0   : > { %v1925_v11 = vpop.f32.mrf.mxu0 }
 0x3f1   : > { %v1786_v12 = vmax.f32 %v1725_v10, 0.0  ;;  %v1926_v13 = vadd.f32 %v3306_v62, %v1925_v11 }
 0x3f3   : > { %v2019_v14 = vmax.f32 %v1926_v13, 0.0  ;;  %2542 = vmatmul.msk.f32.gmra.mxu0 %vm837_vm2, %v1786_v12 }
 0x3f5   : > { %v2052_v15 = vmul.f32 %v3310_v6, %v2019_v14 }
 0x3f6   : > { %v1727_v16 = vpop.f32.mrf.mxu2 }
 0x3f7   : > { %v1728_v17 = vadd.f32 %v3223_v29, %v1727_v16  ;;  %2558 = vmatmul.msk.f32.gmra.mxu3 %vm837_vm2, %v2052_v15 }
 0x3f8   : > { %v1928_v18 = vpop.f32.mrf.mxu0 }
 0x3f9   : > { %v1787_v19 = vmax.f32 %v1728_v17, 0.0  ;;  %v1929_v20 = vadd.f32 %v3306_v62, %v1928_v18 }
 0x3fb   : > { %v2020_v21 = vmax.f32 %v1929_v20, 0.0  ;;  %2543 = vmatmul.msk.f32.gmra.mxu0 %vm837_vm2, %v1787_v19 }
 0x3fd   : > { %v2053_v22 = vmul.f32 %v3310_v6, %v2020_v21 }
 0x3fe   : > { %v1730_v23 = vpop.f32.mrf.mxu2 }
 0x3ff   : > { %v1731_v24 = vadd.f32 %v3223_v29, %v1730_v23  ;;  %2559 = vmatmul.msk.f32.gmra.mxu3 %vm837_vm2, %v2053_v22 }
 0x400   : > { %v1931_v25 = vpop.f32.mrf.mxu0 }
 0x401   : > { %v1788_v55 = vmax.f32 %v1731_v24, 0.0  ;;  %v1932_v26 = vadd.f32 %v3306_v62, %v1931_v25 }
 0x403   : > { %v2021_v28 = vmax.f32 %v1932_v26, 0.0  ;;  %2544 = vmatmul.msk.f32.gmra.mxu0 %vm837_vm2, %v1788_v55 }
 0x405   : > { %v2054_v30 = vmul.f32 %v3310_v6, %v2021_v28 }
 0x406   : > { %v1733_v31 = vpop.f32.mrf.mxu2 }
 0x407   : > { %v1734_v32 = vadd.f32 %v3223_v29, %v1733_v31  ;;  %2560 = vmatmul.msk.f32.gmra.mxu3 %vm837_vm2, %v2054_v30 }
 0x408   : > { %v1934_v33 = vpop.f32.mrf.mxu0 }
 0x409   : > { %v1789_v34 = vmax.f32 %v1734_v32, 0.0  ;;  %v1935_v35 = vadd.f32 %v3306_v62, %v1934_v33 }
 0x40b   : > { %v2022_v37 = vmax.f32 %v1935_v35, 0.0  ;;  %2545 = vmatmul.msk.f32.gmra.mxu0 %vm837_vm2, %v1789_v34 }
 0x40d   : > { %v2055_v38 = vmul.f32 %v3310_v6, %v2022_v37 }
 0x40e   : > { %v1736_v39 = vpop.f32.mrf.mxu2 }
 0x40f   : > { %v1737_v40 = vadd.f32 %v3223_v29, %v1736_v39  ;;  %2561 = vmatmul.msk.f32.gmra.mxu3 %vm837_vm2, %v2055_v38 }
 0x410   : > { %v1937_v41 = vpop.f32.mrf.mxu0 }
 0x411   : > { %v1790_v42 = vmax.f32 %v1737_v40, 0.0  ;;  %v1938_v43 = vadd.f32 %v3306_v62, %v1937_v41 }
 0x413   : > { %v2023_v27 = vmax.f32 %v1938_v43, 0.0  ;;  %2546 = vmatmul.msk.f32.gmra.mxu0 %vm837_vm2, %v1790_v42 }
 0x415   : > { %v2056_v44 = vmul.f32 %v3310_v6, %v2023_v27 }
 0x416   : > { %v1739_v45 = vpop.f32.mrf.mxu2 }
 0x417   : > { %v1740_v46 = vadd.f32 %v3223_v29, %v1739_v45  ;;  %2562 = vmatmul.msk.f32.gmra.mxu3 %vm837_vm2, %v2056_v44 }
 0x418   : > { %v1940_v47 = vpop.f32.mrf.mxu0 }
 0x419   : > { %v1791_v48 = vmax.f32 %v1740_v46, 0.0  ;;  %v1941_v49 = vadd.f32 %v3306_v62, %v1940_v47 }
 0x41b   : > { %v2024_v50 = vmax.f32 %v1941_v49, 0.0  ;;  %2547 = vmatmul.msk.f32.gmra.mxu0 %vm837_vm2, %v1791_v48 }
 0x41d   : > { %v2057_v51 = vmul.f32 %v3310_v6, %v2024_v50 }
 0x41e   : > { %v1742_v52 = vpop.f32.mrf.mxu2 }
 0x41f   : > { %v1743_v53 = vadd.f32 %v3223_v29, %v1742_v52  ;;  %2563 = vmatmul.msk.f32.gmra.mxu3 %vm837_vm2, %v2057_v51 }
 0x420   : > { %v1943_v54 = vpop.f32.mrf.mxu0 }
 0x421   : > { %v1792_v56 = vmax.f32 %v1743_v53, 0.0  ;;  %v1944_v57 = vadd.f32 %v3306_v62, %v1943_v54 }
 0x423   : > { %v2025_v58 = vmax.f32 %v1944_v57, 0.0  ;;  %2548 = vmatmul.msk.f32.gmra.mxu0 %vm837_vm2, %v1792_v56 }
 0x425   : > { %v2058_v59 = vmul.f32 %v3310_v6, %v2025_v58  ;;  %v3399_v58 = vld [vmem:[%s3570_s24] ss:$0 sm:$0xff] }
 0x426   : > { %v1745_v60 = vpop.f32.mrf.mxu2 }
 0x427   : > { %v1746_v61 = vadd.f32 %v3223_v29, %v1745_v60  ;;  %2564 = vmatmul.msk.f32.gmra.mxu3 %vm837_vm2, %v2058_v59 }
 0x428   : > { %v1946_v36 = vpop.f32.mrf.mxu0 }
 0x429   : > { %v1793_v63 = vmax.f32 %v1746_v61, 0.0  ;;  %v1947_v0 = vadd.f32 %v3306_v62, %v1946_v36 }
 0x42b   : > { %v2026_v1 = vmax.f32 %v1947_v0, 0.0  ;;  %2549 = vmatmul.msk.f32.gmra.mxu0 %vm837_vm2, %v1793_v63 }
 0x42d   : > { %v2059_v2 = vmul.f32 %v3310_v6, %v2026_v1 }
 0x42e   : > { %v1748_v3 = vpop.f32.mrf.mxu2 }
 0x42f   : > { %v1749_v4 = vadd.f32 %v3223_v29, %v1748_v3  ;;  %2565 = vmatmul.msk.f32.gmra.mxu3 %vm837_vm2, %v2059_v2 }
 0x430   : > { %v1949_v5 = vpop.f32.mrf.mxu0 }
 0x431   : > { %v1794_v7 = vmax.f32 %v1749_v4, 0.0  ;;  %v1950_v8 = vadd.f32 %v3306_v62, %v1949_v5 }
 0x433   : > { %v2027_v9 = vmax.f32 %v1950_v8, 0.0  ;;  %2550 = vmatmul.msk.f32.gmra.mxu0 %vm837_vm2, %v1794_v7 }
 0x435   : > { %v2060_v10 = vmul.f32 %v3310_v6, %v2027_v9 }
 0x436   : > { %v1751_v11 = vpop.f32.mrf.mxu2 }
 0x437   : > { %v1752_v12 = vadd.f32 %v3223_v29, %v1751_v11  ;;  %2566 = vmatmul.msk.f32.gmra.mxu3 %vm837_vm2, %v2060_v10 }
 0x438   : > { %v1952_v13 = vpop.f32.mrf.mxu0 }
 0x439   : > { %v1795_v14 = vmax.f32 %v1752_v12, 0.0  ;;  %v1953_v15 = vadd.f32 %v3306_v62, %v1952_v13 }
 0x43b   : > { %v2028_v16 = vmax.f32 %v1953_v15, 0.0  ;;  %2551 = vmatmul.msk.f32.gmra.mxu0 %vm837_vm2, %v1795_v14 }
 0x43d   : > { %v2061_v17 = vmul.f32 %v3310_v6, %v2028_v16 }
 0x43e   : > { %v1754_v18 = vpop.f32.mrf.mxu2 }
 0x43f   : > { %v1755_v19 = vadd.f32 %v3223_v29, %v1754_v18  ;;  %2567 = vmatmul.msk.f32.gmra.mxu3 %vm837_vm2, %v2061_v17 }
 0x440   : > { %v1955_v20 = vpop.f32.mrf.mxu0 }
 0x441   : > { %v1796_v21 = vmax.f32 %v1755_v19, 0.0  ;;  %v1956_v22 = vadd.f32 %v3306_v62, %v1955_v20 }
 0x443   : > { %v2029_v23 = vmax.f32 %v1956_v22, 0.0  ;;  %2552 = vmatmul.msk.f32.gmra.mxu0 %vm837_vm2, %v1796_v21 }
 0x445   : > { %v2062_v24 = vmul.f32 %v3310_v6, %v2029_v23 }
 0x446   : > { %v1757_v25 = vpop.f32.mrf.mxu2 }
 0x447   : > { %v1758_v55 = vadd.f32 %v3223_v29, %v1757_v25  ;;  %2568 = vmatmul.msk.f32.gmra.mxu3 %vm837_vm2, %v2062_v24 }
 0x448   : > { %v1958_v26 = vpop.f32.mrf.mxu0 }
 0x449   : > { %v1797_v28 = vmax.f32 %v1758_v55, 0.0  ;;  %v1959_v30 = vadd.f32 %v3306_v62, %v1958_v26 }
 0x44b   : > { %v2030_v31 = vmax.f32 %v1959_v30, 0.0  ;;  %2553 = vmatmul.msk.f32.gmra.mxu0 %vm837_vm2, %v1797_v28 }
 0x44d   : > { %v2063_v32 = vmul.f32 %v3310_v6, %v2030_v31 }
 0x44e   : > { %v1760_v33 = vpop.f32.mrf.mxu2 }
 0x44f   : > { %v1761_v34 = vadd.f32 %v3223_v29, %v1760_v33  ;;  %2569 = vmatmul.msk.f32.gmra.mxu3 %vm837_vm2, %v2063_v32 }
 0x450   : > { %v1961_v35 = vpop.f32.mrf.mxu0 }
 0x451   : > { %v1798_v37 = vmax.f32 %v1761_v34, 0.0  ;;  %v1962_v38 = vadd.f32 %v3306_v62, %v1961_v35 }
 0x453   : > { %v2031_v39 = vmax.f32 %v1962_v38, 0.0  ;;  %2554 = vmatmul.msk.f32.gmra.mxu0 %vm837_vm2, %v1798_v37 }
 0x455   : > { %v2064_v40 = vmul.f32 %v3310_v6, %v2031_v39 }
 0x456   : > { %v1763_v41 = vpop.f32.mrf.mxu2 }
 0x457   : > { %v1764_v42 = vadd.f32 %v3223_v29, %v1763_v41  ;;  %2570 = vmatmul.msk.f32.gmra.mxu3 %vm837_vm2, %v2064_v40 }
 0x458   : > { %v1964_v43 = vpop.f32.mrf.mxu0 }
 0x459   : > { %v1799_v27 = vmax.f32 %v1764_v42, 0.0  ;;  %v1965_v44 = vadd.f32 %v3306_v62, %v1964_v43 }
 0x45b   : > { %v2032_v45 = vmax.f32 %v1965_v44, 0.0  ;;  %2555 = vmatmul.msk.f32.gmra.mxu0 %vm837_vm2, %v1799_v27 }
 0x45d   : > { %v2065_v46 = vmul.f32 %v3310_v6, %v2032_v45 }
 0x45e   : > { %v1766_v47 = vpop.f32.mrf.mxu2 }
 0x45f   : > { %v1767_v48 = vadd.f32 %v3223_v29, %v1766_v47  ;;  %2571 = vmatmul.msk.f32.gmra.mxu3 %vm837_vm2, %v2065_v46 }
 0x460   : > { %v1967_v49 = vpop.f32.mrf.mxu0 }
 0x461   : > { %v1800_v50 = vmax.f32 %v1767_v48, 0.0  ;;  %v1968_v51 = vadd.f32 %v3306_v62, %v1967_v49 }
 0x463   : > { %v2033_v52 = vmax.f32 %v1968_v51, 0.0  ;;  %2556 = vmatmul.msk.f32.gmra.mxu0 %vm837_vm2, %v1800_v50 }
 0x465   : > { %v2066_v53 = vmul.f32 %v3310_v6, %v2033_v52 }
 0x467   : > { %2572 = vmatmul.msk.f32.gmra.mxu3 %vm837_vm2, %v2066_v53 }
 0x468   : > { %v1970_v54 = vpop.f32.mrf.mxu0 }
 0x469   : > { %v1971_v56 = vadd.f32 %v3306_v62, %v1970_v54 }
 0x46b   : > { %v2034_v57 = vmax.f32 %v1971_v56, 0.0 }
 0x46d   : > { %v2067_v29 = vmul.f32 %v3310_v6, %v2034_v57 }
 0x46f   : > { %2573 = vmatmul.msk.f32.gmra.mxu3 %vm837_vm2, %v2067_v29 }
 0x470   : > { %v1973_v59 = vpop.f32.mrf.mxu0 }
 0x471   : > { %v1974_v60 = vadd.f32 %v3306_v62, %v1973_v59 }
 0x472   : > { %v2204_v61 = vpop.f32.mrf.mxu3 }
 0x473   : > { %v2035_v36 = vmax.f32 %v1974_v60, 0.0  ;;  %v2205_v63 = vadd.f32 %v3399_v58, %v2204_v61 }
 0x475   : > { %v2068_v0 = vmul.f32 %v3310_v6, %v2035_v36  ;;  %2300 = vst [vmem:[%s3404_s6] sm:$0xff] %v2205_v63 }
 0x477   : > { %2574 = vmatmul.msk.f32.gmra.mxu3 %vm837_vm2, %v2068_v0 }
 0x478   : > { %v1976_v1 = vpop.f32.mrf.mxu0 }
 0x479   : > { %v1977_v2 = vadd.f32 %v3306_v62, %v1976_v1 }
 0x47a   : > { %v2207_v3 = vpop.f32.mrf.mxu3 }
 0x47b   : > { %v2036_v4 = vmax.f32 %v1977_v2, 0.0  ;;  %v2208_v5 = vadd.f32 %v3399_v58, %v2207_v3 }
 0x47d   : > { %v2069_v7 = vmul.f32 %v3310_v6, %v2036_v4  ;;  %2301 = vst [vmem:[%s3404_s6 + $0x8] sm:$0xff] %v2208_v5 }
 0x47f   : > { %2575 = vmatmul.msk.f32.gmra.mxu3 %vm837_vm2, %v2069_v7 }
 0x480   : > { %v1979_v8 = vpop.f32.mrf.mxu0 }
 0x481   : > { %v1980_v9 = vadd.f32 %v3306_v62, %v1979_v8 }
 0x482   : > { %v2210_v10 = vpop.f32.mrf.mxu3 }
 0x483   : > { %v2037_v11 = vmax.f32 %v1980_v9, 0.0  ;;  %v2211_v12 = vadd.f32 %v3399_v58, %v2210_v10 }
 0x485   : > { %v2070_v13 = vmul.f32 %v3310_v6, %v2037_v11  ;;  %2302 = vst [vmem:[%s3404_s6 + $0x10] sm:$0xff] %v2211_v12 }
 0x487   : > { %2576 = vmatmul.msk.f32.gmra.mxu3 %vm837_vm2, %v2070_v13 }
 0x488   : > { %v1982_v14 = vpop.f32.mrf.mxu0 }
 0x489   : > { %v1983_v15 = vadd.f32 %v3306_v62, %v1982_v14 }
 0x48a   : > { %v2213_v16 = vpop.f32.mrf.mxu3 }
 0x48b   : > { %v2038_v17 = vmax.f32 %v1983_v15, 0.0  ;;  %v2214_v18 = vadd.f32 %v3399_v58, %v2213_v16 }
 0x48d   : > { %v2071_v19 = vmul.f32 %v3310_v6, %v2038_v17  ;;  %2303 = vst [vmem:[%s3404_s6 + $0x18] sm:$0xff] %v2214_v18 }
 0x48f   : > { %2577 = vmatmul.msk.f32.gmra.mxu3 %vm837_vm2, %v2071_v19 }
 0x490   : > { %v1985_v20 = vpop.f32.mrf.mxu0 }
 0x491   : > { %v1986_v21 = vadd.f32 %v3306_v62, %v1985_v20 }
 0x492   : > { %v2216_v22 = vpop.f32.mrf.mxu3 }
 0x493   : > { %v2039_v23 = vmax.f32 %v1986_v21, 0.0  ;;  %v2217_v24 = vadd.f32 %v3399_v58, %v2216_v22 }
 0x495   : > { %v2072_v25 = vmul.f32 %v3310_v6, %v2039_v23  ;;  %2304 = vst [vmem:[%s3404_s6 + $0x20] sm:$0xff] %v2217_v24 }
 0x497   : > { %2578 = vmatmul.msk.f32.gmra.mxu3 %vm837_vm2, %v2072_v25 }
 0x498   : > { %v1988_v55 = vpop.f32.mrf.mxu0 }
 0x499   : > { %v1989_v26 = vadd.f32 %v3306_v62, %v1988_v55 }
 0x49a   : > { %v2219_v28 = vpop.f32.mrf.mxu3 }
 0x49b   : > { %v2040_v30 = vmax.f32 %v1989_v26, 0.0  ;;  %v2220_v31 = vadd.f32 %v3399_v58, %v2219_v28 }
 0x49d   : > { %v2073_v32 = vmul.f32 %v3310_v6, %v2040_v30  ;;  %2305 = vst [vmem:[%s3404_s6 + $0x28] sm:$0xff] %v2220_v31 }
 0x49f   : > { %2579 = vmatmul.msk.f32.gmra.mxu3 %vm837_vm2, %v2073_v32 }
 0x4a0   : > { %v1991_v33 = vpop.f32.mrf.mxu0 }
 0x4a1   : > { %v1992_v34 = vadd.f32 %v3306_v62, %v1991_v33 }
 0x4a2   : > { %v2222_v35 = vpop.f32.mrf.mxu3 }
 0x4a3   : > { %v2041_v37 = vmax.f32 %v1992_v34, 0.0  ;;  %v2223_v38 = vadd.f32 %v3399_v58, %v2222_v35 }
 0x4a5   : > { %v2074_v39 = vmul.f32 %v3310_v6, %v2041_v37  ;;  %2306 = vst [vmem:[%s3404_s6 + $0x30] sm:$0xff] %v2223_v38 }
 0x4a7   : > { %2580 = vmatmul.msk.f32.gmra.mxu3 %vm837_vm2, %v2074_v39 }
 0x4a8   : > { %v1994_v40 = vpop.f32.mrf.mxu0 }
 0x4a9   : > { %v1995_v41 = vadd.f32 %v3306_v62, %v1994_v40 }
 0x4aa   : > { %v2225_v42 = vpop.f32.mrf.mxu3 }
 0x4ab   : > { %v2042_v43 = vmax.f32 %v1995_v41, 0.0  ;;  %v2226_v27 = vadd.f32 %v3399_v58, %v2225_v42 }
 0x4ad   : > { %v2075_v44 = vmul.f32 %v3310_v6, %v2042_v43  ;;  %2307 = vst [vmem:[%s3404_s6 + $0x38] sm:$0xff] %v2226_v27 }
 0x4af   : > { %2581 = vmatmul.msk.f32.gmra.mxu3 %vm837_vm2, %v2075_v44 }
 0x4b0   : > { %v1997_v45 = vpop.f32.mrf.mxu0 }
 0x4b1   : > { %v1998_v46 = vadd.f32 %v3306_v62, %v1997_v45 }
 0x4b2   : > { %v2228_v47 = vpop.f32.mrf.mxu3 }
 0x4b3   : > { %v2043_v48 = vmax.f32 %v1998_v46, 0.0  ;;  %v2229_v49 = vadd.f32 %v3399_v58, %v2228_v47 }
 0x4b5   : > { %v2076_v50 = vmul.f32 %v3310_v6, %v2043_v48  ;;  %2308 = vst [vmem:[%s3404_s6 + $0x40] sm:$0xff] %v2229_v49 }
 0x4b7   : > { %2582 = vmatmul.msk.f32.gmra.mxu3 %vm837_vm2, %v2076_v50 }
 0x4b8   : > { %v2000_v51 = vpop.f32.mrf.mxu0 }
 0x4b9   : > { %v2001_v52 = vadd.f32 %v3306_v62, %v2000_v51 }
 0x4ba   : > { %v2231_v53 = vpop.f32.mrf.mxu3 }
 0x4bb   : > { %v2044_v54 = vmax.f32 %v2001_v52, 0.0  ;;  %v2232_v56 = vadd.f32 %v3399_v58, %v2231_v53 }
 0x4bd   : > { %v2077_v57 = vmul.f32 %v3310_v6, %v2044_v54  ;;  %2309 = vst [vmem:[%s3404_s6 + $0x48] sm:$0xff] %v2232_v56 }
 0x4bf   : > { %2583 = vmatmul.msk.f32.gmra.mxu3 %vm837_vm2, %v2077_v57 }
 0x4c0   : > { %v2003_v29 = vpop.f32.mrf.mxu0 }
 0x4c1   : > { %v2004_v59 = vadd.f32 %v3306_v62, %v2003_v29 }
 0x4c2   : > { %v2234_v60 = vpop.f32.mrf.mxu3 }
 0x4c3   : > { %v2045_v61 = vmax.f32 %v2004_v59, 0.0  ;;  %v2235_v36 = vadd.f32 %v3399_v58, %v2234_v60 }
 0x4c5   : > { %v2078_v63 = vmul.f32 %v3310_v6, %v2045_v61  ;;  %2310 = vst [vmem:[%s3404_s6 + $0x50] sm:$0xff] %v2235_v36 }
 0x4c7   : > { %2584 = vmatmul.msk.f32.gmra.mxu3 %vm837_vm2, %v2078_v63 }
 0x4c8   : > { %v2006_v0 = vpop.f32.mrf.mxu0 }
 0x4c9   : > { %v2007_v1 = vadd.f32 %v3306_v62, %v2006_v0 }
 0x4ca   : > { %v2237_v2 = vpop.f32.mrf.mxu3 }
 0x4cb   : > { %v2046_v3 = vmax.f32 %v2007_v1, 0.0  ;;  %v2238_v4 = vadd.f32 %v3399_v58, %v2237_v2 }
 0x4cd   : > { %v2079_v5 = vmul.f32 %v3310_v6, %v2046_v3  ;;  %2311 = vst [vmem:[%s3404_s6 + $0x58] sm:$0xff] %v2238_v4 }
 0x4cf   : > { %2585 = vmatmul.msk.f32.gmra.mxu3 %vm837_vm2, %v2079_v5 }
 0x4d0   : > { %v2009_v7 = vpop.f32.mrf.mxu0 }
 0x4d1   : > { %v2010_v8 = vadd.f32 %v3306_v62, %v2009_v7 }
 0x4d2   : > { %v2240_v9 = vpop.f32.mrf.mxu3 }
 0x4d3   : > { %v2047_v10 = vmax.f32 %v2010_v8, 0.0  ;;  %v2241_v11 = vadd.f32 %v3399_v58, %v2240_v9 }
 0x4d5   : > { %v2080_v12 = vmul.f32 %v3310_v6, %v2047_v10  ;;  %2312 = vst [vmem:[%s3404_s6 + $0x60] sm:$0xff] %v2241_v11 }
 0x4d7   : > { %2586 = vmatmul.msk.f32.gmra.mxu3 %vm837_vm2, %v2080_v12 }
 0x4d8   : > { %v2012_v13 = vpop.f32.mrf.mxu0 }
 0x4d9   : > { %v2013_v14 = vadd.f32 %v3306_v62, %v2012_v13 }
 0x4da   : > { %v2243_v15 = vpop.f32.mrf.mxu3 }
 0x4db   : > { %v2048_v16 = vmax.f32 %v2013_v14, 0.0  ;;  %v2244_v17 = vadd.f32 %v3399_v58, %v2243_v15 }
 0x4dd   : > { %v2081_v18 = vmul.f32 %v3310_v6, %v2048_v16  ;;  %2313 = vst [vmem:[%s3404_s6 + $0x68] sm:$0xff] %v2244_v17 }
 0x4df   : > { %2587 = vmatmul.msk.f32.gmra.mxu3 %vm837_vm2, %v2081_v18 }
 0x4e0   : > { %v2015_v19 = vpop.f32.mrf.mxu0 }
 0x4e1   : > { %v2016_v20 = vadd.f32 %v3306_v62, %v2015_v19 }
 0x4e2   : > { %v2246_v21 = vpop.f32.mrf.mxu3 }
 0x4e3   : > { %v2049_v22 = vmax.f32 %v2016_v20, 0.0  ;;  %v2247_v23 = vadd.f32 %v3399_v58, %v2246_v21 }
 0x4e5   : > { %v2082_v24 = vmul.f32 %v3310_v6, %v2049_v22  ;;  %2314 = vst [vmem:[%s3404_s6 + $0x70] sm:$0xff] %v2247_v23 }
 0x4e7   : > { %2588 = vmatmul.msk.f32.gmra.mxu3 %vm837_vm2, %v2082_v24 }
 0x4ea   : > { %v2249_v25 = vpop.f32.mrf.mxu3 }
 0x4eb   : > { %v2250_v55 = vadd.f32 %v3399_v58, %v2249_v25 }
 0x4ed   : > { %2315 = vst [vmem:[%s3404_s6 + $0x78] sm:$0xff] %v2250_v55 }
 0x4f2   : > { %v2252_v26 = vpop.f32.mrf.mxu3 }
 0x4f3   : > { %v2253_v28 = vadd.f32 %v3399_v58, %v2252_v26 }
 0x4f5   : > { %2316 = vst [vmem:[%s3404_s6 + $0x80] sm:$0xff] %v2253_v28 }
 0x4fa   : > { %v2255_v62 = vpop.f32.mrf.mxu3 }
 0x4fb   : > { %v2256_v30 = vadd.f32 %v3399_v58, %v2255_v62 }
 0x4fd   : > { %2317 = vst [vmem:[%s3404_s6 + $0x88] sm:$0xff] %v2256_v30 }
 0x502   : > { %v2258_v6 = vpop.f32.mrf.mxu3 }
 0x503   : > { %v2259_v31 = vadd.f32 %v3399_v58, %v2258_v6 }
 0x505   : > { %2318 = vst [vmem:[%s3404_s6 + $0x90] sm:$0xff] %v2259_v31 }
 0x50a   : > { %v2261_v32 = vpop.f32.mrf.mxu3 }
 0x50b   : > { %v2262_v33 = vadd.f32 %v3399_v58, %v2261_v32 }
 0x50d   : > { %2319 = vst [vmem:[%s3404_s6 + $0x98] sm:$0xff] %v2262_v33 }
 0x512   : > { %v2264_v34 = vpop.f32.mrf.mxu3 }
 0x513   : > { %v2265_v35 = vadd.f32 %v3399_v58, %v2264_v34 }
 0x515   : > { %2320 = vst [vmem:[%s3404_s6 + $0xa0] sm:$0xff] %v2265_v35 }
 0x51a   : > { %v2267_v37 = vpop.f32.mrf.mxu3 }
 0x51b   : > { %v2268_v38 = vadd.f32 %v3399_v58, %v2267_v37 }
 0x51d   : > { %2321 = vst [vmem:[%s3404_s6 + $0xa8] sm:$0xff] %v2268_v38 }
 0x522   : > { %v2270_v39 = vpop.f32.mrf.mxu3 }
 0x523   : > { %v2271_v40 = vadd.f32 %v3399_v58, %v2270_v39 }
 0x525   : > { %2322 = vst [vmem:[%s3404_s6 + $0xb0] sm:$0xff] %v2271_v40 }
 0x52a   : > { %v2273_v41 = vpop.f32.mrf.mxu3 }
 0x52b   : > { %v2274_v42 = vadd.f32 %v3399_v58, %v2273_v41 }
 0x52d   : > { %2323 = vst [vmem:[%s3404_s6 + $0xb8] sm:$0xff] %v2274_v42 }
 0x532   : > { %v2276_v43 = vpop.f32.mrf.mxu3 }
 0x533   : > { %v2277_v27 = vadd.f32 %v3399_v58, %v2276_v43 }
 0x535   : > { %2324 = vst [vmem:[%s3404_s6 + $0xc0] sm:$0xff] %v2277_v27 }
 0x53a   : > { %v2279_v44 = vpop.f32.mrf.mxu3 }
 0x53b   : > { %v2280_v45 = vadd.f32 %v3399_v58, %v2279_v44 }
 0x53d   : > { %2325 = vst [vmem:[%s3404_s6 + $0xc8] sm:$0xff] %v2280_v45 }
 0x542   : > { %v2282_v46 = vpop.f32.mrf.mxu3 }
 0x543   : > { %v2283_v47 = vadd.f32 %v3399_v58, %v2282_v46 }
 0x545   : > { %2326 = vst [vmem:[%s3404_s6 + $0xd0] sm:$0xff] %v2283_v47 }
 0x54a   : > { %v2285_v48 = vpop.f32.mrf.mxu3 }
 0x54b   : > { %v2286_v49 = vadd.f32 %v3399_v58, %v2285_v48 }
 0x54d   : > { %2327 = vst [vmem:[%s3404_s6 + $0xd8] sm:$0xff] %v2286_v49 }
 0x552   : > { %v2288_v50 = vpop.f32.mrf.mxu3 }
 0x553   : > { %v2289_v51 = vadd.f32 %v3399_v58, %v2288_v50 }
 0x555   : > { %2328 = vst [vmem:[%s3404_s6 + $0xe0] sm:$0xff] %v2289_v51 }
 0x55a   : > { %v2291_v52 = vpop.f32.mrf.mxu3 }
 0x55b   : > { %v2292_v53 = vadd.f32 %v3399_v58, %v2291_v52 }
 0x55d   : > { %2329 = vst [vmem:[%s3404_s6 + $0xe8] sm:$0xff] %v2292_v53 }
 0x562   : > { %v2294_v54 = vpop.f32.mrf.mxu3 }
 0x563   : > { %v2295_v56 = vadd.f32 %v3399_v58, %v2294_v54 }
 0x565   : > { %2330 = vst [vmem:[%s3404_s6 + $0xf0] sm:$0xff] %v2295_v56 }
 0x56a   : > { %v2297_v57 = vpop.f32.mrf.mxu3 }
 0x56b   : > { %v2298_v29 = vadd.f32 %v3399_v58, %v2297_v57 }
 0x56d   : > { %2331 = vst [vmem:[%s3404_s6 + $0xf8] sm:$0xff] %v2298_v29 }
 0x56e   : > { %2680 = shalt.err (!%p2677_p3)
}
 0x56f   : > { %s2718_s5 = smov 128   ;;  %s2719_s6 = smov 8  }
 0x570   : > { %2598 = dma.vmem_to_hbm [thread:$0]  (%p2888_p5), %s2346_s0, 4096, %s2348_s29, %s2333_s1, %s2718_s5, %s2718_s5, %s2719_s6  }
 0x571 PF: > { %s3624_s11 = sld [smem:[#allocation7_spill]] }
 0x572   : > { %s3625_s12 = sld [smem:[#allocation5_spill]] }
 0x577   : > { %p2604_p4 = scmp.ge.s32.totalorder %s3624_s11, 2 }
 0x578   : > { %s2362_s27 = sand.u32 1, %s3625_s12  }
 0x579   : > { %p2601_p7 = pnand %p2604_p4, %p2892_p6  ;;  %s2363_s10 = scalar_lea.sflag [#allocation3], %s2362_s27 }
 0x57b   : > { %p2602_p8 = pneg %p2601_p7 }
 0x57d   : > { %2698 = dma.done.wait (%p2602_p8), %s2363_s10, 4096  }
 0x57e   : > { %2700 = vsyncadd (%p2602_p8), %s2363_s10, 4294963200  ;;  %s3627_s30 = sld [smem:[#allocation8_spill]]  ;;  %s3630_s29 = smov %s2707_s2 }
 0x57f   : > { %s3628_s3 = sld [smem:[#allocation6_spill]] }
 0x580   : > { %s3629_s6 = sld [smem:[#allocation9_spill]] }
 0x584   : > { %p35_p9 = scmp.ge.s32.totalorder %s3627_s30, 6  }
 0x585   : > { %s3631_s2 = smov %s3628_s3 }
 0x586   :  { %37 = sbr.rel (!%p35_p9) target bundleno = 19 (0x13), region = 155 }
 0x58b   :  { %2369 = vsyncpa [#allocation3], 1 }
 0x58c   :  { %2371 = vsyncpa [#allocation3 + $0x1], 1 }

</bundles_post_ra>
